<compile_context>
chip_gen: v7x
topology: tpu7x:2x2x1
jax: 0.10.0
libtpu: 0.0.40
codegen_flags: <defaults>
</compile_context>

<pallas_src>
import functools

import jax
import jax.numpy as jnp
from jax.experimental import pallas as pl
from jax.experimental.pallas import tpu as pltpu


def _round_up(x, m):
    return (x + m - 1) // m * m


def _conv_bn_act_kernel(x_ref, w_ref, scale_ref, shift_ref, o_ref, *,
                        kh_eff, kw_eff, wp, block_m):
    """One (block_m, block_n) output tile.

    x_ref:     (1, 1, block_m + halo, C)   flat halo'd activation rows
    w_ref:     (kh_eff*kw_eff, C, block_n) per-tap weights
    scale_ref: (1, block_n)   gamma / sqrt(var + eps)           (f32)
    shift_ref: (1, block_n)   (bias - mean) * scale + beta      (f32)
    o_ref:     (1, block_m, block_n)
    """
    block_n = o_ref.shape[-1]
    acc = jnp.zeros((block_m, block_n), jnp.float32)
    # Unrolled tap loop: KH*KW small MXU matmuls over shifted VMEM slices,
    # accumulated in f32.  Offsets are static (flat index = kh*Wp + kw).
    for kh in range(kh_eff):
        for kw in range(kw_eff):
            t = kh * kw_eff + kw
            off = kh * wp + kw
            lhs = x_ref[0, 0, pl.ds(off, block_m), :]
            acc = acc + jnp.dot(lhs, w_ref[t],
                                preferred_element_type=jnp.float32)
    y = acc * scale_ref[...] + shift_ref[...]              # folded eval BN
    o_ref[0] = jnp.maximum(y, 0.0).astype(o_ref.dtype)     # act_fn = F.relu


def conv_bn_act(x_nchw, weight_oihw, bias, gamma, beta, running_mean,
                running_var, *, stride=1, eps=1e-5, block_m=1024,
                compute_dtype=jnp.bfloat16, out_dtype=None):
    assert stride in (1, 2)
    N, Cin, H, W = x_nchw.shape
    Cout, Cin_w, KH, KW = weight_oihw.shape
    assert Cin_w == Cin
    # gen_efficientnet pad_type='' same-padding formula assumes odd kernels
    # and dilation=1 (guard per review).
    assert KH % 2 == 1 and KW % 2 == 1, "same-pad formula needs odd kernel"
    out_dtype = x_nchw.dtype if out_dtype is None else out_dtype

    pad_h = ((stride - 1) + (KH - 1)) // 2
    pad_w = ((stride - 1) + (KW - 1)) // 2
    Ho = (H + 2 * pad_h - KH) // stride + 1
    Wo = (W + 2 * pad_w - KW) // stride + 1

    # ---- wrapper-side layout plumbing (zero FLOPs) ------------------------
    # TODO(synk): if the surrounding model runs NHWC end-to-end, both the
    # input and output transposes below can be dropped (one full-tensor HBM
    # pass each).
    x = jnp.transpose(x_nchw, (0, 2, 3, 1))                     # NHWC
    x = jnp.pad(x, ((0, 0), (pad_h, pad_h), (pad_w, pad_w), (0, 0)))
    w = jnp.transpose(weight_oihw, (2, 3, 1, 0))                # (KH,KW,Ci,O)

    if stride == 2:
        # Space-to-depth: stride-2 KxK conv == stride-1 ceil(K/2)-tap conv
        # over 4*Cin phase channels.  No data duplication.
        Hp, Wp_ = x.shape[1], x.shape[2]
        x = jnp.pad(x, ((0, 0), (0, Hp % 2), (0, Wp_ % 2), (0, 0)))
        Hp, Wp_ = x.shape[1], x.shape[2]
        x = x.reshape(N, Hp // 2, 2, Wp_ // 2, 2, Cin)
        x = jnp.transpose(x, (0, 1, 3, 2, 4, 5)).reshape(
            N, Hp // 2, Wp_ // 2, 4 * Cin)
        KH_e, KW_e = (KH + 1) // 2, (KW + 1) // 2
        w = jnp.pad(w, ((0, 2 * KH_e - KH), (0, 2 * KW_e - KW),
                        (0, 0), (0, 0)))
        w = w.reshape(KH_e, 2, KW_e, 2, Cin, Cout)
        w = jnp.transpose(w, (0, 2, 1, 3, 4, 5)).reshape(
            KH_e, KW_e, 4 * Cin, Cout)
        KH, KW, C = KH_e, KW_e, 4 * Cin
    else:
        C = Cin

    Hp_s, Wp_s = x.shape[1], x.shape[2]        # effective stride-1 padded dims
    assert Hp_s == Ho + KH - 1 and Wp_s == Wo + KW - 1, (Hp_s, Wp_s, Ho, Wo)

    taps = KH * KW
    Mimg = Ho * Wp_s                 # flat rows per image; the KW-1 columns at
                                     # each row end are computed and discarded
    halo = (KH - 1) * Wp_s + (KW - 1)

    block_m = _round_up(max(8, min(block_m, _round_up(Mimg, 8))), 8)
    M_pad = _round_up(Mimg, block_m)
    n_mb = M_pad // block_m

    Cout_pad = _round_up(Cout, 128)            # lane-dense output
    block_n = 128
    for cand in (512, 384, 256, 128):          # fill the 256-wide MXU (v6e/v7x)
        if Cout_pad % cand == 0:
            block_n = cand
            break
    n_nb = Cout_pad // block_n

    # Flat halo-blocked activations: x_hb[n, r] covers flat output rows
    # [r*block_m, (r+1)*block_m) plus the (KH-1)*Wp + (KW-1) halo.
    x_flat = x.reshape(N, Hp_s * Wp_s, C)
    need = M_pad + halo
    x_flat = jnp.pad(x_flat, ((0, 0), (0, need - Hp_s * Wp_s), (0, 0)))
    x_hb = jnp.stack(
        [x_flat[:, r * block_m: r * block_m + block_m + halo, :]
         for r in range(n_mb)], axis=1).astype(compute_dtype)
    # x_hb: (N, n_mb, block_m + halo, C)

    w_k = w.reshape(taps, C, Cout)
    w_k = jnp.pad(w_k, ((0, 0), (0, 0), (0, Cout_pad - Cout))
                  ).astype(compute_dtype)

    # Eval-mode BatchNorm (running stats) + conv bias folded into a
    # per-channel scale/shift (f32).
    scale = (gamma / jnp.sqrt(running_var + eps)).astype(jnp.float32)
    shift = ((bias - running_mean) * scale + beta).astype(jnp.float32)
    scale2 = jnp.pad(scale, (0, Cout_pad - Cout)).reshape(1, Cout_pad)
    shift2 = jnp.pad(shift, (0, Cout_pad - Cout)).reshape(1, Cout_pad)

    csize = jnp.dtype(compute_dtype).itemsize
    kernel = functools.partial(_conv_bn_act_kernel, kh_eff=KH, kw_eff=KW,
                               wp=Wp_s, block_m=block_m)

    # VMEM budget for the chosen tiles: double-buffered activations & output,
    # single-buffered weight/scale/shift, f32 accumulator + one dot temp.
    vmem_est = (2 * (block_m + halo) * max(C, 128) * csize
                + taps * max(C, 8) * block_n * csize
                + 2 * block_m * block_n * csize
                + 2 * block_m * block_n * 4
                + 4 * block_n * 4)
    vmem_limit = int(min(64 << 20, max(32 << 20, 2 * vmem_est)))

    cost = pl.CostEstimate(
        flops=int(2 * N * Ho * Wo * taps * C * Cout),
        transcendentals=0,
        bytes_accessed=int(x_hb.size * csize + w_k.size * csize
                           + N * M_pad * Cout_pad * csize))

    grid = (N, n_nb, n_mb)    # innermost m sweep keeps the weight tile fixed
    out3d = pl.pallas_call(
        kernel,
        out_shape=jax.ShapeDtypeStruct((N, M_pad, Cout_pad), compute_dtype),
        grid_spec=pltpu.PrefetchScalarGridSpec(
            num_scalar_prefetch=0,
            grid=grid,
            in_specs=[
                pl.BlockSpec((1, 1, block_m + halo, C),
                             lambda n, j, i: (n, i, 0, 0)),
                pl.BlockSpec((taps, C, block_n),
                             lambda n, j, i: (0, 0, j),
                             pipeline_mode=pl.Buffered(1)),
                pl.BlockSpec((1, block_n), lambda n, j, i: (0, j),
                             pipeline_mode=pl.Buffered(1)),
                pl.BlockSpec((1, block_n), lambda n, j, i: (0, j),
                             pipeline_mode=pl.Buffered(1)),
            ],
            out_specs=pl.BlockSpec((1, block_m, block_n),
                                   lambda n, j, i: (n, i, j)),
        ),
        compiler_params=pltpu.CompilerParams(
            dimension_semantics=("parallel", "parallel", "parallel"),
            vmem_limit_bytes=vmem_limit),
        cost_estimate=cost,
    )(x_hb, w_k, scale2, shift2)

    # Drop garbage columns / padded rows / padded channels, back to NCHW.
    out = out3d[:, :Mimg, :Cout].reshape(N, Ho, Wp_s, Cout)[:, :, :Wo, :]
    out = jnp.transpose(out, (0, 3, 1, 2))
    return out.astype(out_dtype)


def _reference(x, w, b, gamma, beta, mean, var, *, stride, pad, eps):
    Cout = w.shape[0]
    y = jax.lax.conv_general_dilated(
        x, w, window_strides=(stride, stride),
        padding=[(pad, pad), (pad, pad)],
        dimension_numbers=("NCHW", "OIHW", "NCHW"))
    y = y + b.reshape(1, Cout, 1, 1)
    y = (y - mean.reshape(1, Cout, 1, 1)) / jnp.sqrt(
        var.reshape(1, Cout, 1, 1) + eps)
    y = y * gamma.reshape(1, Cout, 1, 1) + beta.reshape(1, Cout, 1, 1)
    return jnp.maximum(y, 0.0)


if __name__ == "__main__":
    # Module config: in_chs=4, out_chs=8, kernel_size=3, pad_type='' (same).
    N, Cin, H, W = 2, 4, 16, 16
    Cout, K, eps = 8, 3, 1e-5

    key = jax.random.PRNGKey(0)
    ks = jax.random.split(key, 7)
    x = jax.random.normal(ks[0], (N, Cin, H, W), jnp.float32)
    weight = jax.random.normal(ks[1], (Cout, Cin, K, K), jnp.float32) * 0.1
    bias = jax.random.normal(ks[2], (Cout,), jnp.float32) * 0.1
    gamma = 1.0 + 0.1 * jax.random.normal(ks[3], (Cout,), jnp.float32)
    beta = 0.1 * jax.random.normal(ks[4], (Cout,), jnp.float32)
    running_mean = 0.1 * jax.random.normal(ks[5], (Cout,), jnp.float32)
    running_var = jnp.abs(jax.random.normal(ks[6], (Cout,), jnp.float32)) + 0.5

    for stride in (1, 2):
        pad = ((stride - 1) + (K - 1)) // 2
        ref = jax.block_until_ready(_reference(
            x, weight, bias, gamma, beta, running_mean, running_var,
            stride=stride, pad=pad, eps=eps))

        # f32 compute path: tight check against the module semantics.
        out_f32 = jax.block_until_ready(conv_bn_act(
            x, weight, bias, gamma, beta, running_mean, running_var,
            stride=stride, eps=eps, compute_dtype=jnp.float32))
        assert out_f32.shape == ref.shape, (out_f32.shape, ref.shape)
        err = float(jnp.max(jnp.abs(out_f32 - ref)))
        assert jnp.allclose(out_f32, ref, atol=1e-4, rtol=1e-4), err

        # bf16 compute path (default perf config): loose check, f32 accumulate.
        out_bf16 = jax.block_until_ready(conv_bn_act(
            x, weight, bias, gamma, beta, running_mean, running_var,
            stride=stride, eps=eps, compute_dtype=jnp.bfloat16))
        assert out_bf16.shape == ref.shape, (out_bf16.shape, ref.shape)
        err = float(jnp.max(jnp.abs(out_bf16 - ref)))
        assert jnp.allclose(out_bf16, ref, atol=5e-2, rtol=5e-2), err

    print("KERNEL_OK")
</pallas_src>

<mosaic_0001>
module attributes {stable_mosaic.version = 11 : i64} {
  func.func @_conv_bn_act_kernel(%arg0: i32, %arg1: i32, %arg2: i32, %arg3: memref<1x1x326x4xf32, #tpu.memory_space<vmem>>, %arg4: memref<9x4x128xf32, #tpu.memory_space<vmem>>, %arg5: memref<1x128xf32, #tpu.memory_space<vmem>>, %arg6: memref<1x128xf32, #tpu.memory_space<vmem>>, %arg7: memref<1x288x128xf32, #tpu.memory_space<vmem>>) attributes {dimension_semantics = [#tpu.dimension_semantics<parallel>, #tpu.dimension_semantics<parallel>, #tpu.dimension_semantics<parallel>], iteration_bounds = array<i64: 2, 1, 1>, scalar_prefetch = 0 : i64, scratch_operands = 0 : i64, tpu.core_type = #tpu.core_type<tc>, window_params = [{transform_indices = @transform_0, window_bounds = array<i64: 1, 1, 326, 4>}, {pipeline_mode = #tpu.pipeline_mode<synchronous>, transform_indices = @transform_1, window_bounds = array<i64: 9, 4, 128>}, {pipeline_mode = #tpu.pipeline_mode<synchronous>, transform_indices = @transform_2, window_bounds = array<i64: 1, 128>}, {pipeline_mode = #tpu.pipeline_mode<synchronous>, transform_indices = @transform_3, window_bounds = array<i64: 1, 128>}, {transform_indices = @transform_4, window_bounds = array<i64: 1, 288, 128>}]} {
    %cst = arith.constant 0.000000e+00 : f32
    %0 = vector.broadcast %cst : f32 to vector<288x128xf32>
    %c0 = arith.constant 0 : index
    %c0_0 = arith.constant 0 : index
    %c0_1 = arith.constant 0 : index
    %c0_2 = arith.constant 0 : index
    %1 = vector.load %arg3[%c0, %c0_0, %c0_1, %c0_2] : memref<1x1x326x4xf32, #tpu.memory_space<vmem>>, vector<1x1x288x4xf32>
    %2 = vector.shape_cast %1 : vector<1x1x288x4xf32> to vector<288x4xf32>
    %c0_3 = arith.constant 0 : index
    %c0_4 = arith.constant 0 : index
    %c0_5 = arith.constant 0 : index
    %3 = vector.load %arg4[%c0_3, %c0_4, %c0_5] : memref<9x4x128xf32, #tpu.memory_space<vmem>>, vector<1x4x128xf32>
    %4 = vector.shape_cast %3 : vector<1x4x128xf32> to vector<4x128xf32>
    %cst_6 = arith.constant dense<0.000000e+00> : vector<288x128xf32>
    %5 = tpu.matmul %2, %4, %cst_6 {dimension_numbers = #tpu.dot_dimension_numbers<[1], [0], [0], [1], [0, 0, 1, 1], [], []>} : vector<288x4xf32>, vector<4x128xf32>, vector<288x128xf32> -> vector<288x128xf32>
    %6 = arith.addf %0, %5 : vector<288x128xf32>
    %c0_7 = arith.constant 0 : index
    %c0_8 = arith.constant 0 : index
    %c1 = arith.constant 1 : index
    %c0_9 = arith.constant 0 : index
    %7 = vector.load %arg3[%c0_7, %c0_8, %c1, %c0_9] : memref<1x1x326x4xf32, #tpu.memory_space<vmem>>, vector<1x1x288x4xf32>
    %8 = vector.shape_cast %7 : vector<1x1x288x4xf32> to vector<288x4xf32>
    %c1_10 = arith.constant 1 : index
    %c0_11 = arith.constant 0 : index
    %c0_12 = arith.constant 0 : index
    %9 = vector.load %arg4[%c1_10, %c0_11, %c0_12] : memref<9x4x128xf32, #tpu.memory_space<vmem>>, vector<1x4x128xf32>
    %10 = vector.shape_cast %9 : vector<1x4x128xf32> to vector<4x128xf32>
    %cst_13 = arith.constant dense<0.000000e+00> : vector<288x128xf32>
    %11 = tpu.matmul %8, %10, %cst_13 {dimension_numbers = #tpu.dot_dimension_numbers<[1], [0], [0], [1], [0, 0, 1, 1], [], []>} : vector<288x4xf32>, vector<4x128xf32>, vector<288x128xf32> -> vector<288x128xf32>
    %12 = arith.addf %6, %11 : vector<288x128xf32>
    %c0_14 = arith.constant 0 : index
    %c0_15 = arith.constant 0 : index
    %c2 = arith.constant 2 : index
    %c0_16 = arith.constant 0 : index
    %13 = vector.load %arg3[%c0_14, %c0_15, %c2, %c0_16] : memref<1x1x326x4xf32, #tpu.memory_space<vmem>>, vector<1x1x288x4xf32>
    %14 = vector.shape_cast %13 : vector<1x1x288x4xf32> to vector<288x4xf32>
    %c2_17 = arith.constant 2 : index
    %c0_18 = arith.constant 0 : index
    %c0_19 = arith.constant 0 : index
    %15 = vector.load %arg4[%c2_17, %c0_18, %c0_19] : memref<9x4x128xf32, #tpu.memory_space<vmem>>, vector<1x4x128xf32>
    %16 = vector.shape_cast %15 : vector<1x4x128xf32> to vector<4x128xf32>
    %cst_20 = arith.constant dense<0.000000e+00> : vector<288x128xf32>
    %17 = tpu.matmul %14, %16, %cst_20 {dimension_numbers = #tpu.dot_dimension_numbers<[1], [0], [0], [1], [0, 0, 1, 1], [], []>} : vector<288x4xf32>, vector<4x128xf32>, vector<288x128xf32> -> vector<288x128xf32>
    %18 = arith.addf %12, %17 : vector<288x128xf32>
    %c0_21 = arith.constant 0 : index
    %c0_22 = arith.constant 0 : index
    %c18 = arith.constant 18 : index
    %c0_23 = arith.constant 0 : index
    %19 = vector.load %arg3[%c0_21, %c0_22, %c18, %c0_23] : memref<1x1x326x4xf32, #tpu.memory_space<vmem>>, vector<1x1x288x4xf32>
    %20 = vector.shape_cast %19 : vector<1x1x288x4xf32> to vector<288x4xf32>
    %c3 = arith.constant 3 : index
    %c0_24 = arith.constant 0 : index
    %c0_25 = arith.constant 0 : index
    %21 = vector.load %arg4[%c3, %c0_24, %c0_25] : memref<9x4x128xf32, #tpu.memory_space<vmem>>, vector<1x4x128xf32>
    %22 = vector.shape_cast %21 : vector<1x4x128xf32> to vector<4x128xf32>
    %cst_26 = arith.constant dense<0.000000e+00> : vector<288x128xf32>
    %23 = tpu.matmul %20, %22, %cst_26 {dimension_numbers = #tpu.dot_dimension_numbers<[1], [0], [0], [1], [0, 0, 1, 1], [], []>} : vector<288x4xf32>, vector<4x128xf32>, vector<288x128xf32> -> vector<288x128xf32>
    %24 = arith.addf %18, %23 : vector<288x128xf32>
    %c0_27 = arith.constant 0 : index
    %c0_28 = arith.constant 0 : index
    %c19 = arith.constant 19 : index
    %c0_29 = arith.constant 0 : index
    %25 = vector.load %arg3[%c0_27, %c0_28, %c19, %c0_29] : memref<1x1x326x4xf32, #tpu.memory_space<vmem>>, vector<1x1x288x4xf32>
    %26 = vector.shape_cast %25 : vector<1x1x288x4xf32> to vector<288x4xf32>
    %c4 = arith.constant 4 : index
    %c0_30 = arith.constant 0 : index
    %c0_31 = arith.constant 0 : index
    %27 = vector.load %arg4[%c4, %c0_30, %c0_31] : memref<9x4x128xf32, #tpu.memory_space<vmem>>, vector<1x4x128xf32>
    %28 = vector.shape_cast %27 : vector<1x4x128xf32> to vector<4x128xf32>
    %cst_32 = arith.constant dense<0.000000e+00> : vector<288x128xf32>
    %29 = tpu.matmul %26, %28, %cst_32 {dimension_numbers = #tpu.dot_dimension_numbers<[1], [0], [0], [1], [0, 0, 1, 1], [], []>} : vector<288x4xf32>, vector<4x128xf32>, vector<288x128xf32> -> vector<288x128xf32>
    %30 = arith.addf %24, %29 : vector<288x128xf32>
    %c0_33 = arith.constant 0 : index
    %c0_34 = arith.constant 0 : index
    %c20 = arith.constant 20 : index
    %c0_35 = arith.constant 0 : index
    %31 = vector.load %arg3[%c0_33, %c0_34, %c20, %c0_35] : memref<1x1x326x4xf32, #tpu.memory_space<vmem>>, vector<1x1x288x4xf32>
    %32 = vector.shape_cast %31 : vector<1x1x288x4xf32> to vector<288x4xf32>
    %c5 = arith.constant 5 : index
    %c0_36 = arith.constant 0 : index
    %c0_37 = arith.constant 0 : index
    %33 = vector.load %arg4[%c5, %c0_36, %c0_37] : memref<9x4x128xf32, #tpu.memory_space<vmem>>, vector<1x4x128xf32>
    %34 = vector.shape_cast %33 : vector<1x4x128xf32> to vector<4x128xf32>
    %cst_38 = arith.constant dense<0.000000e+00> : vector<288x128xf32>
    %35 = tpu.matmul %32, %34, %cst_38 {dimension_numbers = #tpu.dot_dimension_numbers<[1], [0], [0], [1], [0, 0, 1, 1], [], []>} : vector<288x4xf32>, vector<4x128xf32>, vector<288x128xf32> -> vector<288x128xf32>
    %36 = arith.addf %30, %35 : vector<288x128xf32>
    %c0_39 = arith.constant 0 : index
    %c0_40 = arith.constant 0 : index
    %c36 = arith.constant 36 : index
    %c0_41 = arith.constant 0 : index
    %37 = vector.load %arg3[%c0_39, %c0_40, %c36, %c0_41] : memref<1x1x326x4xf32, #tpu.memory_space<vmem>>, vector<1x1x288x4xf32>
    %38 = vector.shape_cast %37 : vector<1x1x288x4xf32> to vector<288x4xf32>
    %c6 = arith.constant 6 : index
    %c0_42 = arith.constant 0 : index
    %c0_43 = arith.constant 0 : index
    %39 = vector.load %arg4[%c6, %c0_42, %c0_43] : memref<9x4x128xf32, #tpu.memory_space<vmem>>, vector<1x4x128xf32>
    %40 = vector.shape_cast %39 : vector<1x4x128xf32> to vector<4x128xf32>
    %cst_44 = arith.constant dense<0.000000e+00> : vector<288x128xf32>
    %41 = tpu.matmul %38, %40, %cst_44 {dimension_numbers = #tpu.dot_dimension_numbers<[1], [0], [0], [1], [0, 0, 1, 1], [], []>} : vector<288x4xf32>, vector<4x128xf32>, vector<288x128xf32> -> vector<288x128xf32>
    %42 = arith.addf %36, %41 : vector<288x128xf32>
    %c0_45 = arith.constant 0 : index
    %c0_46 = arith.constant 0 : index
    %c37 = arith.constant 37 : index
    %c0_47 = arith.constant 0 : index
    %43 = vector.load %arg3[%c0_45, %c0_46, %c37, %c0_47] : memref<1x1x326x4xf32, #tpu.memory_space<vmem>>, vector<1x1x288x4xf32>
    %44 = vector.shape_cast %43 : vector<1x1x288x4xf32> to vector<288x4xf32>
    %c7 = arith.constant 7 : index
    %c0_48 = arith.constant 0 : index
    %c0_49 = arith.constant 0 : index
    %45 = vector.load %arg4[%c7, %c0_48, %c0_49] : memref<9x4x128xf32, #tpu.memory_space<vmem>>, vector<1x4x128xf32>
    %46 = vector.shape_cast %45 : vector<1x4x128xf32> to vector<4x128xf32>
    %cst_50 = arith.constant dense<0.000000e+00> : vector<288x128xf32>
    %47 = tpu.matmul %44, %46, %cst_50 {dimension_numbers = #tpu.dot_dimension_numbers<[1], [0], [0], [1], [0, 0, 1, 1], [], []>} : vector<288x4xf32>, vector<4x128xf32>, vector<288x128xf32> -> vector<288x128xf32>
    %48 = arith.addf %42, %47 : vector<288x128xf32>
    %c0_51 = arith.constant 0 : index
    %c0_52 = arith.constant 0 : index
    %c38 = arith.constant 38 : index
    %c0_53 = arith.constant 0 : index
    %49 = vector.load %arg3[%c0_51, %c0_52, %c38, %c0_53] : memref<1x1x326x4xf32, #tpu.memory_space<vmem>>, vector<1x1x288x4xf32>
    %50 = vector.shape_cast %49 : vector<1x1x288x4xf32> to vector<288x4xf32>
    %c8 = arith.constant 8 : index
    %c0_54 = arith.constant 0 : index
    %c0_55 = arith.constant 0 : index
    %51 = vector.load %arg4[%c8, %c0_54, %c0_55] : memref<9x4x128xf32, #tpu.memory_space<vmem>>, vector<1x4x128xf32>
    %52 = vector.shape_cast %51 : vector<1x4x128xf32> to vector<4x128xf32>
    %cst_56 = arith.constant dense<0.000000e+00> : vector<288x128xf32>
    %53 = tpu.matmul %50, %52, %cst_56 {dimension_numbers = #tpu.dot_dimension_numbers<[1], [0], [0], [1], [0, 0, 1, 1], [], []>} : vector<288x4xf32>, vector<4x128xf32>, vector<288x128xf32> -> vector<288x128xf32>
    %54 = arith.addf %48, %53 : vector<288x128xf32>
    %c0_57 = arith.constant 0 : index
    %c0_58 = arith.constant 0 : index
    %55 = vector.load %arg5[%c0_57, %c0_58] : memref<1x128xf32, #tpu.memory_space<vmem>>, vector<1x128xf32>
    %56 = vector.broadcast %55 : vector<1x128xf32> to vector<288x128xf32>
    %57 = arith.mulf %54, %56 : vector<288x128xf32>
    %c0_59 = arith.constant 0 : index
    %c0_60 = arith.constant 0 : index
    %58 = vector.load %arg6[%c0_59, %c0_60] : memref<1x128xf32, #tpu.memory_space<vmem>>, vector<1x128xf32>
    %59 = vector.broadcast %58 : vector<1x128xf32> to vector<288x128xf32>
    %60 = arith.addf %57, %59 : vector<288x128xf32>
    %cst_61 = arith.constant 0.000000e+00 : f32
    %61 = vector.broadcast %cst_61 : f32 to vector<288x128xf32>
    %62 = arith.maximumf %60, %61 : vector<288x128xf32>
    %c0_62 = arith.constant 0 : index
    %c0_63 = arith.constant 0 : index
    %c0_64 = arith.constant 0 : index
    %63 = vector.load %arg7[%c0_62, %c0_63, %c0_64] : memref<1x288x128xf32, #tpu.memory_space<vmem>>, vector<1x288x128xf32>
    %64 = vector.shape_cast %63 : vector<1x288x128xf32> to vector<288x128xf32>
    %65 = vector.shape_cast %62 : vector<288x128xf32> to vector<1x288x128xf32>
    tpu.vector_store %arg7[%c0_62, %c0_63, %c0_64], %65 {strides = array<i32>} : memref<1x288x128xf32, #tpu.memory_space<vmem>>, vector<1x288x128xf32>,
    return
  }
  func.func @transform_0(%arg0: i32, %arg1: i32, %arg2: i32) -> (i32, i32, i32, i32) {
    %c0_i32 = arith.constant 0 : i32
    %c0_i32_0 = arith.constant 0 : i32
    %c0_i32_1 = arith.constant 0 : i32
    return %arg0, %arg2, %c0_i32, %c0_i32_0 : i32, i32, i32, i32
  }
  func.func @transform_1(%arg0: i32, %arg1: i32, %arg2: i32) -> (i32, i32, i32) {
    %c0_i32 = arith.constant 0 : i32
    %c0_i32_0 = arith.constant 0 : i32
    %c0_i32_1 = arith.constant 0 : i32
    return %c0_i32, %c0_i32_0, %arg1 : i32, i32, i32
  }
  func.func @transform_2(%arg0: i32, %arg1: i32, %arg2: i32) -> (i32, i32) {
    %c0_i32 = arith.constant 0 : i32
    %c0_i32_0 = arith.constant 0 : i32
    return %c0_i32, %arg1 : i32, i32
  }
  func.func @transform_3(%arg0: i32, %arg1: i32, %arg2: i32) -> (i32, i32) {
    %c0_i32 = arith.constant 0 : i32
    %c0_i32_0 = arith.constant 0 : i32
    return %c0_i32, %arg1 : i32, i32
  }
  func.func @transform_4(%arg0: i32, %arg1: i32, %arg2: i32) -> (i32, i32, i32) {
    %c0_i32 = arith.constant 0 : i32
    return %arg0, %arg2, %arg1 : i32, i32, i32
  }
}

</mosaic_0001>

<bundles_post_ra>
// kernel: tpu_custom_call.1
= control target key start
LH: loop header
LB: loop body
LE: loop exit
PB: predicated region body
PF: predicated region fallthrough
CT: control target
= control target key end

     0   :  { %9 = vsyncpa [#allocation3], 0  ;;  %s7219_s0 = inlined_call_operand.vmem [shape: f32[2,1,326,4], index: 0, kind: input, shape index: {}]   ;;  %s7220_s1 = inlined_call_operand.vmem [shape: f32[9,4,128], index: 1, kind: input, shape index: {}]   ;;  %s7221_s2 = inlined_call_operand.vmem [shape: f32[1,128], index: 2, kind: input, shape index: {}]   ;;  %s7222_s3 = inlined_call_operand.vmem [shape: f32[1,128], index: 3, kind: input, shape index: {}]   ;;  %s7223_s4 = inlined_call_operand.hbm [shape: f32[2,288,128], index: 4, kind: output, shape index: {}]  }
   0x1   :  { %11 = vsyncpa [#allocation3 + $0x1], 0  ;;  %s6028_s15 = smov 0   ;;  %s6030_s16 = smov 0  }
   0x2   :  { %s6032_s17 = smov 0   ;;  %s6034_s18 = smov 0  }
   0x3   :  { %s6036_s19 = smov 0   ;;  %s6038_s20 = smov 0  }
   0x4 LB: > { %s4378_s21 = sadd.s32 4294967295, %s5998_s20   ;;  %s4379_s22 = sadd.s32 4294967294, %s5998_s20   ;;  %s5998_s20 = sphi %s6038_s20, %s17_s20   ;;  %s5994_s19 = sphi %s6036_s19, %s7230_s19   ;;  %s5990_s18 = sphi %s6034_s18, %s7229_s18   ;;  %s5986_s17 = sphi %s6032_s17, %s7228_s17   ;;  %s5982_s16 = sphi %s6030_s16, %s7227_s16   ;;  %s5978_s15 = sphi %s6028_s15, %s7226_s15  }
   0x5   : > { %s36_s23 = sadd.s32 1, %s5994_s19  ;;  %s153_s24 = sadd.s32 1, %s5986_s17 }
   0x6   : > { %p38_p0 = scmp.ge.s32.totalorder %s36_s23, 2  ;;  %p163_p1 = scmp.ne.s32.totalorder %s5986_s17, %s5982_s16 }
   0x7   : > { %p164_p2 = scmp.eq.s32.totalorder %s4378_s21, 1  ;;  %p169_p3 = scmp.ne.s32.totalorder %s5982_s16, %s5978_s15 }
   0x8   : > { %s7232_s23 = smov (%p38_p0, %s36_s23), 0  ;;  %p170_p5 = scmp.eq.s32.totalorder %s4379_s22, 1 }
   0x9   : > { %p6068_p4 = por %p164_p2, %p163_p1  ;;  %s146_s26 = ssub.s32 %s5994_s19, %s7232_s23 }
   0xa   : > { %p4385_p6 = scmp.ge.s32.totalorder %s5998_s20, 1  ;;  %p151_p7 = scmp.eq.s32.totalorder %s146_s26, 0 }
   0xb   : > { %p6075_p8 = por %p170_p5, %p169_p3  ;;  %p219_p9 = scmp.lt.s32.totalorder %s5998_s20, 3 }
   0xc   : > { %s6081_s28 = scalar_select %p151_p7, %s5986_s17, %s153_s24  }
   0xd   : > { %p220_p10 = pnand %p4385_p6, %p219_p9 }
   0xe   : > { %v4387_v0 = vld [vmem:[%s7220_s1 + $0x4] sm:$0xf] (!%p220_p10)  ;;  %vm463_vm0 = vcmask (!%p220_p10), 1043456   ;;  %v6089_v1 = vld [vmem:[%s7220_s1 + $0x10] sm:$0xf] (!%p220_p10)  ;;  %p259_p11 = scmp.lt.s32.totalorder (!%p220_p10), %s5990_s18, 1 }
   0xf   : > { %223 = sbr.rel (%p220_p10) target bundleno = 585 (0x249), region = 36  ;;  %5066 = vmatprep.subr.msk.mxu1 (!%p220_p10), %vm463_vm0, %v4387_v0  ;;  %5290 = vmatprep.subr.msk.mxu0 (!%p220_p10), %vm463_vm0, %v6089_v1  ;;  %v315_v2 = vld [vmem:[%s7220_s1] sm:$0xf] (!%p220_p10)  ;;  %v4576_v3 = vld [vmem:[%s7220_s1 + $0x14] sm:$0xf] (!%p220_p10)  ;;  %vm354_vm1 = vcmask (!%p220_p10), 31744  }
  0x10   : > { %5067 = vmatpush3.msk.msra.mxu1 (!%p220_p10), %vm463_vm0, %v4387_v0  ;;  %5291 = vmatpush3.msk.msra.mxu0 (!%p220_p10), %vm463_vm0, %v6089_v1  ;;  %v6125_v10 = vld [vmem:[%s7220_s1 + $0x18] sm:$0xf] (!%p220_p10)  ;;  %v6130_v11 = vld [vmem:[%s7220_s1 + $0x8] sm:$0xf] (!%p220_p10)  ;;  %v6213_v48 = vld [vmem:[%s7220_s1 + $0x1c] sm:$0xf] (!%p220_p10) }
  0x11   : > { %5122 = vmatprep.subr.msk.mxu1 (!%p220_p10), %vm463_vm0, %v315_v2  ;;  %5346 = vmatprep.subr.msk.mxu0 (!%p220_p10), %vm463_vm0, %v4576_v3  ;;  %s256_s10 = sand.u32 (!%p220_p10), 1, %s5982_s16   ;;  %s5862_s24 = smul.u32 (!%p220_p10), 4608, %s5990_s18 }
  0x12   : > { %s5860_s13 = smul.u32 (!%p220_p10), 288, %s256_s10  ;;  %s6000_s7 = smov (!%p220_p10), [#allocation2]  }
  0x13   : > { %s7165_s5 = scalar_lea.hbm (!%p220_p10), %s7223_s4, %s5862_s24  ;;  %s5924_s8 = sshll.u32 (!%p220_p10), %s6000_s7, 4  ;;  %s5925_s8 = int_to_ptr.vmem [resolvable:$false] %s5924_s8 }
  0x14   : > { %s7050_s22 = scalar_lea.vmem (!%p220_p10), [#allocation2], %s5860_s13  ;;  %s5926_s9 = scalar_lea.vmem (!%p220_p10), %s5925_s8, 9216 }
  0x15   : > { %s4253_s26 = sshll.u32 (!%p220_p10), %s7050_s22, 4  ;;  %s7167_s26 = int_to_ptr.vmem [resolvable:$true] %s4253_s26 }
  0x16   : > { %s260_s11 = scalar_select %p259_p11, %s5990_s18, 1 }
  0x17   : > { %s7173_s18 = scalar_lea.sflag [#allocation3], %s256_s10  ;;  %s5920_s6 = scalar_lea.vmem %s7167_s26, 4608 }
  0x18   : > { %s5861_s12 = smul.u32 328, %s260_s11  ;;  %p5921_p12 = scmp.ne.s32.totalorder %s7167_s26, %s5920_s6 }
  0x19   : > { %p5927_p1 = scmp.lt.s32.totalorder %s7167_s26, %s5925_s8  ;;  %p5928_p2 = scmp.lt.s32.totalorder %s5926_s9, %s5920_s6 }
  0x1a   : > { %s6110_s21 = scalar_lea.vmem %s7219_s0, %s5861_s12  ;;  %p5922_p13 = pnand %p5921_p12, %p6068_p4 }
  0x1b   : > { %v316_v4 = vld [vmem:[%s6110_s21 + $0x1] sm:$0xff]  ;;  %v1928_v5 = vld [vmem:[%s6110_s21 + $0x13] sm:$0xff]  ;;  %v317_v6 = vld [vmem:[%s6110_s21 + $0x9] sm:$0xff]  ;;  %p5929_p3 = por %p5928_p2, %p5927_p1 }
  0x1c   : > { %5068 = vmatprep.mubr.msk.f32.mxu1 %vm354_vm1, %v316_v4  ;;  %5292 = vmatprep.mubr.msk.f32.mxu0 %vm354_vm1, %v1928_v5  ;;  %v1929_v7 = vld [vmem:[%s6110_s21 + $0x1b] sm:$0xff]  ;;  %v318_v8 = vld [vmem:[%s6110_s21 + $0x11] sm:$0xff]  ;;  %v1930_v9 = vld [vmem:[%s6110_s21 + $0x23] sm:$0xff]  ;;  %p5923_p0 = pneg %p5922_p13 }
  0x1d   : > { %5069 = vmatmul.mubr.msk.f32.vlgmr.msra.gmra.mrb[0].mxu1 %vm354_vm1, %v317_v6  ;;  %5293 = vmatmul.mubr.msk.f32.vlgmr.msra.gmra.mrb[0].mxu0 %vm354_vm1, %v1929_v7  ;;  %v319_v12 = vld [vmem:[%s6110_s21 + $0x19] sm:$0xff]  ;;  %v1931_v13 = vld [vmem:[%s6110_s21 + $0x2b] sm:$0xff]  ;;  %v320_v14 = vld [vmem:[%s6110_s21 + $0x21] sm:$0xff] }
  0x1e   : > { %5123 = vmatpush3.msk.msra.mxu1 %vm463_vm0, %v315_v2  ;;  %5347 = vmatpush3.msk.msra.mxu0 %vm463_vm0, %v4576_v3  ;;  %v1932_v15 = vld [vmem:[%s6110_s21 + $0x33] sm:$0xff]  ;;  %v321_v16 = vld [vmem:[%s6110_s21 + $0x29] sm:$0xff]  ;;  %v1933_v17 = vld [vmem:[%s6110_s21 + $0x3b] sm:$0xff]  ;;  %p5930_p5 = pnand %p5929_p3, %p5923_p0 }
  0x1f   : > { %5071 = vmatprep.mubr.msk.f32.mxu1 %vm354_vm1, %v318_v8  ;;  %5295 = vmatprep.mubr.msk.f32.mxu0 %vm354_vm1, %v1930_v9  ;;  %v322_v18 = vld [vmem:[%s6110_s21 + $0x31] sm:$0xff]  ;;  %v1934_v19 = vld [vmem:[%s6110_s21 + $0x43] sm:$0xff]  ;;  %v323_v20 = vld [vmem:[%s6110_s21 + $0x39] sm:$0xff] }
  0x20   : > { %5402 = vmatprep.subr.msk.mxu0 %vm463_vm0, %v6125_v10  ;;  %5178 = vmatprep.subr.msk.mxu1 %vm463_vm0, %v6130_v11  ;;  %v1935_v21 = vld [vmem:[%s6110_s21 + $0x4b] sm:$0xff]  ;;  %v324_v22 = vld [vmem:[%s6110_s21 + $0x41] sm:$0xff]  ;;  %v1936_v23 = vld [vmem:[%s6110_s21 + $0x53] sm:$0xff] }
  0x21   : > { %5072 = vmatmul.mubr.msk.f32.gmra.mrb[2].mxu1 %vm354_vm1, %v319_v12  ;;  %5296 = vmatmul.mubr.msk.f32.gmra.mrb[2].mxu0 %vm354_vm1, %v1931_v13  ;;  %v325_v24 = vld [vmem:[%s6110_s21 + $0x49] sm:$0xff]  ;;  %v1937_v25 = vld [vmem:[%s6110_s21 + $0x5b] sm:$0xff]  ;;  %v326_v26 = vld [vmem:[%s6110_s21 + $0x51] sm:$0xff] }
  0x22   : > { %5074 = vmatprep.mubr.msk.f32.mxu1 %vm354_vm1, %v320_v14  ;;  %5298 = vmatprep.mubr.msk.f32.mxu0 %vm354_vm1, %v1932_v15  ;;  %v1938_v27 = vld [vmem:[%s6110_s21 + $0x63] sm:$0xff]  ;;  %v327_v28 = vld [vmem:[%s6110_s21 + $0x59] sm:$0xff]  ;;  %v1939_v29 = vld [vmem:[%s6110_s21 + $0x6b] sm:$0xff] }
  0x23   : > { %v328_v30 = vld [vmem:[%s6110_s21 + $0x61] sm:$0xff]  ;;  %v1940_v31 = vld [vmem:[%s6110_s21 + $0x73] sm:$0xff]  ;;  %v329_v32 = vld [vmem:[%s6110_s21 + $0x69] sm:$0xff] }
  0x24   : > { %v1941_v33 = vld [vmem:[%s6110_s21 + $0x7b] sm:$0xff]  ;;  %v330_v34 = vld [vmem:[%s6110_s21 + $0x71] sm:$0xff]  ;;  %v1942_v35 = vld [vmem:[%s6110_s21 + $0x83] sm:$0xff] }
  0x25   : > { %5075 = vmatmul.mubr.msk.f32.gmra.mrb[4].mxu1 %vm354_vm1, %v321_v16  ;;  %5299 = vmatmul.mubr.msk.f32.gmra.mrb[4].mxu0 %vm354_vm1, %v1933_v17  ;;  %v331_v36 = vld [vmem:[%s6110_s21 + $0x79] sm:$0xff]  ;;  %v1943_v37 = vld [vmem:[%s6110_s21 + $0x8b] sm:$0xff]  ;;  %v332_v38 = vld [vmem:[%s6110_s21 + $0x81] sm:$0xff] }
  0x26   : > { %5077 = vmatprep.mubr.msk.f32.mxu1 %vm354_vm1, %v322_v18  ;;  %5301 = vmatprep.mubr.msk.f32.mxu0 %vm354_vm1, %v1934_v19  ;;  %v1944_v39 = vld [vmem:[%s6110_s21 + $0x93] sm:$0xff]  ;;  %v333_v40 = vld [vmem:[%s6110_s21 + $0x89] sm:$0xff]  ;;  %v1945_v41 = vld [vmem:[%s6110_s21 + $0x9b] sm:$0xff] }
  0x27   : > { %v334_v42 = vld [vmem:[%s6110_s21 + $0x91] sm:$0xff]  ;;  %v335_v44 = vld [vmem:[%s6110_s21 + $0x99] sm:$0xff]  ;;  %v336_v46 = vld [vmem:[%s6110_s21 + $0xa1] sm:$0xff] }
  0x28   : > { %v2358_v43 = vld [vmem:[%s6110_s21 + $0x14] sm:$0xff]  ;;  %v2359_v45 = vld [vmem:[%s6110_s21 + $0x1c] sm:$0xff]  ;;  %v6208_v47 = vld [vmem:[%s6110_s21 + $0x24] sm:$0xff] }
  0x29   : > { %5078 = vmatmul.mubr.msk.f32.gmra.mrb[6].mxu1 %vm354_vm1, %v323_v20  ;;  %5302 = vmatmul.mubr.msk.f32.gmra.mrb[6].mxu0 %vm354_vm1, %v1935_v21  ;;  %v337_v49 = vld [vmem:[%s6110_s21 + $0xa9] sm:$0xff]  ;;  %v338_v51 = vld [vmem:[%s6110_s21 + $0xb1] sm:$0xff]  ;;  %v339_v53 = vld [vmem:[%s6110_s21 + $0xb9] sm:$0xff] }
  0x2a   : > { %5080 = vmatprep.mubr.msk.f32.mxu1 %vm354_vm1, %v324_v22  ;;  %5304 = vmatprep.mubr.msk.f32.mxu0 %vm354_vm1, %v1936_v23  ;;  %v6222_v50 = vld [vmem:[%s6110_s21 + $0x2c] sm:$0xff]  ;;  %v6228_v52 = vld [vmem:[%s6110_s21 + $0x34] sm:$0xff]  ;;  %v6240_v54 = vld [vmem:[%s6110_s21 + $0x3c] sm:$0xff] }
  0x2b   : > { %v340_v55 = vld [vmem:[%s6110_s21 + $0xc1] sm:$0xff]  ;;  %v341_v57 = vld [vmem:[%s6110_s21 + $0xc9] sm:$0xff]  ;;  %v342_v59 = vld [vmem:[%s6110_s21 + $0xd1] sm:$0xff] }
  0x2c   : > { %v6244_v56 = vld [vmem:[%s6110_s21 + $0x44] sm:$0xff]  ;;  %v6254_v58 = vld [vmem:[%s6110_s21 + $0x4c] sm:$0xff]  ;;  %v6258_v60 = vld [vmem:[%s6110_s21 + $0x54] sm:$0xff] }
  0x2d   : > { %5081 = vmatmul.mubr.msk.f32.gmra.mrb[8].mxu1 %vm354_vm1, %v325_v24  ;;  %5305 = vmatmul.mubr.msk.f32.gmra.mrb[8].mxu0 %vm354_vm1, %v1937_v25  ;;  %v343_v61 = vld [vmem:[%s6110_s21 + $0xd9] sm:$0xff]  ;;  %v344_v63 = vld [vmem:[%s6110_s21 + $0xe1] sm:$0xff]  ;;  %v345_v2 = vld [vmem:[%s6110_s21 + $0xe9] sm:$0xff] }
  0x2e   : > { %5083 = vmatprep.mubr.msk.f32.mxu1 %vm354_vm1, %v326_v26  ;;  %5307 = vmatprep.mubr.msk.f32.mxu0 %vm354_vm1, %v1938_v27  ;;  %v6268_v62 = vld [vmem:[%s6110_s21 + $0x5c] sm:$0xff]  ;;  %v6272_v0 = vld [vmem:[%s6110_s21 + $0x64] sm:$0xff]  ;;  %v6282_v3 = vld [vmem:[%s6110_s21 + $0x6c] sm:$0xff] }
  0x2f   : > { %v346_v4 = vld [vmem:[%s6110_s21 + $0xf1] sm:$0xff]  ;;  %v347_v6 = vld [vmem:[%s6110_s21 + $0xf9] sm:$0xff]  ;;  %v348_v8 = vld [vmem:[%s6110_s21 + $0x101] sm:$0xff] }
  0x30   : > { %v6286_v5 = vld [vmem:[%s6110_s21 + $0x74] sm:$0xff]  ;;  %v6296_v7 = vld [vmem:[%s6110_s21 + $0x7c] sm:$0xff]  ;;  %v6300_v9 = vld [vmem:[%s6110_s21 + $0x84] sm:$0xff] }
  0x31   : > { %5084 = vmatmul.mubr.msk.f32.gmra.mrb[10].mxu1 %vm354_vm1, %v327_v28  ;;  %5308 = vmatmul.mubr.msk.f32.gmra.mrb[10].mxu0 %vm354_vm1, %v1939_v29  ;;  %v6310_v12 = vld [vmem:[%s6110_s21 + $0x8c] sm:$0xff]  ;;  %v6314_v14 = vld [vmem:[%s6110_s21 + $0x94] sm:$0xff]  ;;  %v6324_v16 = vld [vmem:[%s6110_s21 + $0x9c] sm:$0xff] }
  0x32   : > { %5086 = vmatprep.mubr.msk.f32.mxu1 %vm354_vm1, %v328_v30  ;;  %5310 = vmatprep.mubr.msk.f32.mxu0 %vm354_vm1, %v1940_v31  ;;  %v350_v13 = vld [vmem:[%s6110_s21 + $0x111] sm:$0xff]  ;;  %v351_v15 = vld [vmem:[%s6110_s21 + $0x119] sm:$0xff]  ;;  %v6328_v18 = vld [vmem:[%s6110_s21 + $0xa4] sm:$0xff] }
  0x33   : > { %v279_v17 = vld [vmem:[%s6110_s21] sm:$0xff]  ;;  %v280_v19 = vld [vmem:[%s6110_s21 + $0x8] sm:$0xff]  ;;  %v281_v21 = vld [vmem:[%s6110_s21 + $0x10] sm:$0xff] }
  0x34   : > { %v6338_v20 = vld [vmem:[%s6110_s21 + $0xac] sm:$0xff]  ;;  %v6342_v22 = vld [vmem:[%s6110_s21 + $0xb4] sm:$0xff]  ;;  %v6357_v25 = vld [vmem:[%s6110_s21 + $0xbc] sm:$0xff] }
  0x35   : > { %5087 = vmatmul.mubr.msk.f32.gmra.mrb[12].mxu1 %vm354_vm1, %v329_v32  ;;  %5311 = vmatmul.mubr.msk.f32.gmra.mrb[12].mxu0 %vm354_vm1, %v1941_v33  ;;  %v6347_v23 = vld [vmem:[%s7220_s1 + $0xc] sm:$0xf]  ;;  %v282_v24 = vld [vmem:[%s6110_s21 + $0x18] sm:$0xff]  ;;  %v283_v26 = vld [vmem:[%s6110_s21 + $0x20] sm:$0xff] }
  0x36   : > { %5089 = vmatprep.mubr.msk.f32.mxu1 %vm354_vm1, %v330_v34  ;;  %5313 = vmatprep.mubr.msk.f32.mxu0 %vm354_vm1, %v1942_v35  ;;  %v6363_v27 = vld [vmem:[%s6110_s21 + $0xc4] sm:$0xff]  ;;  %v6375_v28 = vld [vmem:[%s6110_s21 + $0xcc] sm:$0xff]  ;;  %v6379_v30 = vld [vmem:[%s6110_s21 + $0xd4] sm:$0xff] }
  0x37   : > { %v285_v29 = vld [vmem:[%s6110_s21 + $0x30] sm:$0xff]  ;;  %v286_v31 = vld [vmem:[%s6110_s21 + $0x38] sm:$0xff]  ;;  %v287_v33 = vld [vmem:[%s6110_s21 + $0x40] sm:$0xff] }
  0x38   : > { %v6389_v32 = vld [vmem:[%s6110_s21 + $0xdc] sm:$0xff]  ;;  %v6393_v34 = vld [vmem:[%s6110_s21 + $0xe4] sm:$0xff] }
  0x39   : > { %5090 = vmatmul.mubr.msk.f32.gmra.mrb[14].mxu1 %vm354_vm1, %v331_v36  ;;  %5314 = vmatmul.mubr.msk.f32.gmra.mrb[14].mxu0 %vm354_vm1, %v1943_v37  ;;  %v288_v35 = vld [vmem:[%s6110_s21 + $0x48] sm:$0xff]  ;;  %v289_v37 = vld [vmem:[%s6110_s21 + $0x50] sm:$0xff] }
  0x3a   : > { %5092 = vmatprep.mubr.msk.f32.mxu1 %vm354_vm1, %v332_v38  ;;  %5316 = vmatprep.mubr.msk.f32.mxu0 %vm354_vm1, %v1944_v39  ;;  %v6403_v36 = vld [vmem:[%s6110_s21 + $0xec] sm:$0xff]  ;;  %v6407_v38 = vld [vmem:[%s6110_s21 + $0xf4] sm:$0xff] }
  0x3b   : > { %v290_v39 = vld [vmem:[%s6110_s21 + $0x58] sm:$0xff] }
  0x3d   : > { %5093 = vmatmul.mubr.msk.f32.gmra.mrb[16].mxu1 %vm354_vm1, %v333_v40  ;;  %5317 = vmatmul.mubr.msk.f32.gmra.mrb[16].mxu0 %vm354_vm1, %v1945_v41  ;;  %v6417_v40 = vld [vmem:[%s6110_s21 + $0xfc] sm:$0xff] }
  0x3e   : > { %5095 = vmatprep.mubr.msk.f32.mxu1 %vm354_vm1, %v334_v42  ;;  %5348 = vmatprep.mubr.msk.f32.mxu0 %vm354_vm1, %v2358_v43  ;;  %v291_v41 = vld [vmem:[%s6110_s21 + $0x60] sm:$0xff]  ;;  %v292_v43 = vld [vmem:[%s6110_s21 + $0x68] sm:$0xff] }
  0x3f   : > { %v6421_v42 = vld [vmem:[%s6110_s21 + $0x104] sm:$0xff] }
  0x41   : > { %5096 = vmatmul.mubr.msk.f32.gmra.mrb[18].mxu1 %vm354_vm1, %v335_v44  ;;  %5349 = vmatmul.mubr.msk.f32.vlgmr.msra.gmra.mrb[0].mxu0 %vm354_vm1, %v2359_v45  ;;  %v6431_v44 = vld [vmem:[%s6110_s21 + $0x10c] sm:$0xff] }
  0x42   : > { %5403 = vmatpush3.msk.msra.mxu0 %vm463_vm0, %v6125_v10  ;;  %5098 = vmatprep.mubr.msk.f32.mxu1 %vm354_vm1, %v336_v46  ;;  %v349_v10 = vld [vmem:[%s6110_s21 + $0x109] sm:$0xff]  ;;  %v6435_v46 = vld [vmem:[%s6110_s21 + $0x114] sm:$0xff] }
  0x43   : > { %5351 = vmatprep.mubr.msk.f32.mxu0 %vm354_vm1, %v6208_v47  ;;  %5458 = vmatprep.subr.msk.mxu0 %vm463_vm0, %v6213_v48  ;;  %v293_v45 = vld [vmem:[%s6110_s21 + $0x70] sm:$0xff] }
  0x45   : > { %5099 = vmatmul.mubr.msk.f32.gmra.mrb[20].mxu1 %vm354_vm1, %v337_v49  ;;  %5352 = vmatmul.mubr.msk.f32.gmra.mrb[2].mxu0 %vm354_vm1, %v6222_v50  ;;  %v294_v49 = vld [vmem:[%s6110_s21 + $0x78] sm:$0xff] }
  0x46   : > { %5101 = vmatprep.mubr.msk.f32.mxu1 %vm354_vm1, %v338_v51  ;;  %5354 = vmatprep.mubr.msk.f32.mxu0 %vm354_vm1, %v6228_v52  ;;  %v6445_v51 = vld [vmem:[%s6110_s21 + $0x11c] sm:$0xff] }
  0x49   : > { %5102 = vmatmul.mubr.msk.f32.gmra.mrb[22].mxu1 %vm354_vm1, %v339_v53  ;;  %5355 = vmatmul.mubr.msk.f32.gmra.mrb[4].mxu0 %vm354_vm1, %v6240_v54  ;;  %v295_v53 = vld [vmem:[%s6110_s21 + $0x80] sm:$0xff] }
  0x4a   : > { %5104 = vmatprep.mubr.msk.f32.mxu1 %vm354_vm1, %v340_v55  ;;  %5357 = vmatprep.mubr.msk.f32.mxu0 %vm354_vm1, %v6244_v56  ;;  %v6449_v55 = vld [vmem:[%s6110_s21 + $0x124] sm:$0xff] }
  0x4d   : > { %5105 = vmatmul.mubr.msk.f32.gmra.mrb[24].mxu1 %vm354_vm1, %v341_v57  ;;  %5358 = vmatmul.mubr.msk.f32.gmra.mrb[6].mxu0 %vm354_vm1, %v6254_v58  ;;  %v296_v57 = vld [vmem:[%s6110_s21 + $0x88] sm:$0xff] }
  0x4e   : > { %5107 = vmatprep.mubr.msk.f32.mxu1 %vm354_vm1, %v342_v59  ;;  %5360 = vmatprep.mubr.msk.f32.mxu0 %vm354_vm1, %v6258_v60  ;;  %v6459_v59 = vld [vmem:[%s6110_s21 + $0x12c] sm:$0xff] }
  0x51   : > { %5108 = vmatmul.mubr.msk.f32.gmra.mrb[26].mxu1 %vm354_vm1, %v343_v61  ;;  %5361 = vmatmul.mubr.msk.f32.gmra.mrb[8].mxu0 %vm354_vm1, %v6268_v62  ;;  %v297_v61 = vld [vmem:[%s6110_s21 + $0x90] sm:$0xff] }
  0x52   : > { %5110 = vmatprep.mubr.msk.f32.mxu1 %vm354_vm1, %v344_v63  ;;  %5363 = vmatprep.mubr.msk.f32.mxu0 %vm354_vm1, %v6272_v0  ;;  %v298_v63 = vld [vmem:[%s6110_s21 + $0x98] sm:$0xff] }
  0x55   : > { %5111 = vmatmul.mubr.msk.f32.gmra.mrb[28].mxu1 %vm354_vm1, %v345_v2  ;;  %5364 = vmatmul.mubr.msk.f32.gmra.mrb[10].mxu0 %vm354_vm1, %v6282_v3  ;;  %v299_v2 = vld [vmem:[%s6110_s21 + $0xa0] sm:$0xff] }
  0x56   : > { %5113 = vmatprep.mubr.msk.f32.mxu1 %vm354_vm1, %v346_v4  ;;  %5366 = vmatprep.mubr.msk.f32.mxu0 %vm354_vm1, %v6286_v5  ;;  %v6473_v4 = vld [vmem:[%s7220_s1 + $0x20] sm:$0xf] }
  0x59   : > { %5114 = vmatmul.mubr.msk.f32.gmra.mrb[30].mxu1 %vm354_vm1, %v347_v6  ;;  %5367 = vmatmul.mubr.msk.f32.gmra.mrb[12].mxu0 %vm354_vm1, %v6296_v7  ;;  %v301_v6 = vld [vmem:[%s6110_s21 + $0xb0] sm:$0xff] }
  0x5a   : > { %5116 = vmatprep.mubr.msk.f32.mxu1 %vm354_vm1, %v348_v8  ;;  %5369 = vmatprep.mubr.msk.f32.mxu0 %vm354_vm1, %v6300_v9  ;;  %v314_v8 = vld [vmem:[%s6110_s21 + $0x118] sm:$0xff] }
  0x5d   : > { %5117 = vmatmul.mubr.msk.f32.gmra.mrb[32].mxu1 %vm354_vm1, %v349_v10  ;;  %5370 = vmatmul.mubr.msk.f32.gmra.mrb[14].mxu0 %vm354_vm1, %v6310_v12  ;;  %v1069_v10 = vld [vmem:[%s6110_s21 + $0xa] sm:$0xff] }
  0x5e   : > { %5119 = vmatprep.mubr.msk.f32.mxu1 %vm354_vm1, %v350_v13  ;;  %5372 = vmatprep.mubr.msk.f32.mxu0 %vm354_vm1, %v6314_v14  ;;  %v6561_v13 = vld [vmem:[%s6110_s21 + $0x1a] sm:$0xff] }
  0x61   : > { %5120 = vmatmul.mubr.msk.f32.gmra.mrb[34].mxu1 %vm354_vm1, %v351_v15  ;;  %5373 = vmatmul.mubr.msk.f32.gmra.mrb[16].mxu0 %vm354_vm1, %v6324_v16  ;;  %v6579_v15 = vld [vmem:[%s6110_s21 + $0x2a] sm:$0xff] }
  0x62   : > { %5124 = vmatprep.mubr.msk.f32.mxu1 %vm354_vm1, %v279_v17  ;;  %5375 = vmatprep.mubr.msk.f32.mxu0 %vm354_vm1, %v6328_v18  ;;  %v6593_v17 = vld [vmem:[%s6110_s21 + $0x3a] sm:$0xff] }
  0x65   : > { %5125 = vmatmul.mubr.msk.f32.vlgmr.msra.gmra.mrb[0].mxu1 %vm354_vm1, %v280_v19  ;;  %5376 = vmatmul.mubr.msk.f32.gmra.mrb[18].mxu0 %vm354_vm1, %v6338_v20  ;;  %v6607_v19 = vld [vmem:[%s6110_s21 + $0x4a] sm:$0xff] }
  0x66   : > { %5179 = vmatpush3.msk.msra.mxu1 %vm463_vm0, %v6130_v11  ;;  %5127 = vmatprep.mubr.msk.f32.mxu1 %vm354_vm1, %v281_v21  ;;  %v284_v11 = vld [vmem:[%s6110_s21 + $0x28] sm:$0xff]  ;;  %v6621_v21 = vld [vmem:[%s6110_s21 + $0x5a] sm:$0xff] }
  0x67   : > { %5378 = vmatprep.mubr.msk.f32.mxu0 %vm354_vm1, %v6342_v22  ;;  %5234 = vmatprep.subr.msk.mxu1 %vm463_vm0, %v6347_v23 }
  0x69   : > { %5128 = vmatmul.mubr.msk.f32.gmra.mrb[2].mxu1 %vm354_vm1, %v282_v24  ;;  %5379 = vmatmul.mubr.msk.f32.gmra.mrb[20].mxu0 %vm354_vm1, %v6357_v25  ;;  %v6638_v24 = vld [vmem:[%s6110_s21 + $0x72] sm:$0xff] }
  0x6a   : > { %5130 = vmatprep.mubr.msk.f32.mxu1 %vm354_vm1, %v283_v26  ;;  %5381 = vmatprep.mubr.msk.f32.mxu0 %vm354_vm1, %v6363_v27  ;;  %v6652_v26 = vld [vmem:[%s6110_s21 + $0x82] sm:$0xff] }
  0x6d   : > { %5131 = vmatmul.mubr.msk.f32.gmra.mrb[4].mxu1 %vm354_vm1, %v284_v11  ;;  %5382 = vmatmul.mubr.msk.f32.gmra.mrb[22].mxu0 %vm354_vm1, %v6375_v28  ;;  %v6663_v11 = vld [vmem:[%s6110_s21 + $0x8a] sm:$0xff] }
  0x6e   : > { %5133 = vmatprep.mubr.msk.f32.mxu1 %vm354_vm1, %v285_v29  ;;  %5384 = vmatprep.mubr.msk.f32.mxu0 %vm354_vm1, %v6379_v30  ;;  %v6667_v29 = vld [vmem:[%s6110_s21 + $0x92] sm:$0xff] }
  0x71   : > { %5134 = vmatmul.mubr.msk.f32.gmra.mrb[6].mxu1 %vm354_vm1, %v286_v31  ;;  %5385 = vmatmul.mubr.msk.f32.gmra.mrb[24].mxu0 %vm354_vm1, %v6389_v32  ;;  %v6677_v31 = vld [vmem:[%s6110_s21 + $0x9a] sm:$0xff] }
  0x72   : > { %5136 = vmatprep.mubr.msk.f32.mxu1 %vm354_vm1, %v287_v33  ;;  %5387 = vmatprep.mubr.msk.f32.mxu0 %vm354_vm1, %v6393_v34  ;;  %v6681_v33 = vld [vmem:[%s6110_s21 + $0xa2] sm:$0xff] }
  0x75   : > { %5137 = vmatmul.mubr.msk.f32.gmra.mrb[8].mxu1 %vm354_vm1, %v288_v35  ;;  %5388 = vmatmul.mubr.msk.f32.gmra.mrb[26].mxu0 %vm354_vm1, %v6403_v36  ;;  %v6692_v35 = vld [vmem:[%s6110_s21 + $0xaa] sm:$0xff] }
  0x76   : > { %5139 = vmatprep.mubr.msk.f32.mxu1 %vm354_vm1, %v289_v37  ;;  %5390 = vmatprep.mubr.msk.f32.mxu0 %vm354_vm1, %v6407_v38  ;;  %v6697_v37 = vld [vmem:[%s6110_s21 + $0xb2] sm:$0xff] }
  0x79   : > { %5140 = vmatmul.mubr.msk.f32.gmra.mrb[10].mxu1 %vm354_vm1, %v290_v39  ;;  %5391 = vmatmul.mubr.msk.f32.gmra.mrb[28].mxu0 %vm354_vm1, %v6417_v40  ;;  %v6707_v39 = vld [vmem:[%s6110_s21 + $0xba] sm:$0xff] }
  0x7a   : > { %5142 = vmatprep.mubr.msk.f32.mxu1 %vm354_vm1, %v291_v41  ;;  %5393 = vmatprep.mubr.msk.f32.mxu0 %vm354_vm1, %v6421_v42  ;;  %v6711_v41 = vld [vmem:[%s6110_s21 + $0xc2] sm:$0xff] }
  0x7d   : > { %5143 = vmatmul.mubr.msk.f32.gmra.mrb[12].mxu1 %vm354_vm1, %v292_v43  ;;  %5394 = vmatmul.mubr.msk.f32.gmra.mrb[30].mxu0 %vm354_vm1, %v6431_v44  ;;  %v6721_v43 = vld [vmem:[%s6110_s21 + $0xca] sm:$0xff] }
  0x7e   : > { %5145 = vmatprep.mubr.msk.f32.mxu1 %vm354_vm1, %v293_v45  ;;  %5396 = vmatprep.mubr.msk.f32.mxu0 %vm354_vm1, %v6435_v46  ;;  %v6725_v45 = vld [vmem:[%s6110_s21 + $0xd2] sm:$0xff] }
  0x81   : > { %5146 = vmatmul.mubr.msk.f32.gmra.mrb[14].mxu1 %vm354_vm1, %v294_v49  ;;  %5397 = vmatmul.mubr.msk.f32.gmra.mrb[32].mxu0 %vm354_vm1, %v6445_v51  ;;  %v6735_v49 = vld [vmem:[%s6110_s21 + $0xda] sm:$0xff] }
  0x82   : > { %5148 = vmatprep.mubr.msk.f32.mxu1 %vm354_vm1, %v295_v53  ;;  %5399 = vmatprep.mubr.msk.f32.mxu0 %vm354_vm1, %v6449_v55  ;;  %v6739_v53 = vld [vmem:[%s6110_s21 + $0xe2] sm:$0xff] }
  0x85   : > { %5149 = vmatmul.mubr.msk.f32.gmra.mrb[16].mxu1 %vm354_vm1, %v296_v57  ;;  %5400 = vmatmul.mubr.msk.f32.gmra.mrb[34].mxu0 %vm354_vm1, %v6459_v59  ;;  %v6749_v57 = vld [vmem:[%s6110_s21 + $0xea] sm:$0xff] }
  0x86   : > { %5151 = vmatprep.mubr.msk.f32.mxu1 %vm354_vm1, %v297_v61  ;;  %5404 = vmatprep.mubr.msk.f32.mxu0 %vm354_vm1, %v6208_v47  ;;  %v300_v47 = vld [vmem:[%s6110_s21 + $0xa8] sm:$0xff]  ;;  %v6753_v61 = vld [vmem:[%s6110_s21 + $0xf2] sm:$0xff] }
  0x89   : > { %5152 = vmatmul.mubr.msk.f32.gmra.mrb[18].mxu1 %vm354_vm1, %v298_v63  ;;  %5405 = vmatmul.mubr.msk.f32.vlgmr.msra.gmra.mrb[0].mxu0 %vm354_vm1, %v6222_v50  ;;  %v303_v50 = vld [vmem:[%s6110_s21 + $0xc0] sm:$0xff] }
  0x8a   : > { %5459 = vmatpush3.msk.msra.mxu0 %vm463_vm0, %v6213_v48  ;;  %5154 = vmatprep.mubr.msk.f32.mxu1 %vm354_vm1, %v299_v2  ;;  %v302_v48 = vld [vmem:[%s6110_s21 + $0xb8] sm:$0xff]  ;;  %v3230_v63 = vld [vmem:[%s6110_s21 + $0x85] sm:$0xff] }
  0x8b   : > { %5407 = vmatprep.mubr.msk.f32.mxu0 %vm354_vm1, %v6228_v52  ;;  %5514 = vmatprep.subr.msk.mxu0 %vm463_vm0, %v6473_v4  ;;  %v304_v52 = vld [vmem:[%s6110_s21 + $0xc8] sm:$0xff]  ;;  %v6763_v2 = vld [vmem:[%s6110_s21 + $0xfa] sm:$0xff] }
  0x8d   : > { %5155 = vmatmul.mubr.msk.f32.gmra.mrb[20].mxu1 %vm354_vm1, %v300_v47  ;;  %5408 = vmatmul.mubr.msk.f32.gmra.mrb[2].mxu0 %vm354_vm1, %v6240_v54  ;;  %v305_v54 = vld [vmem:[%s6110_s21 + $0xd0] sm:$0xff]  ;;  %v6767_v47 = vld [vmem:[%s6110_s21 + $0x102] sm:$0xff] }
  0x8e   : > { %5157 = vmatprep.mubr.msk.f32.mxu1 %vm354_vm1, %v301_v6  ;;  %5410 = vmatprep.mubr.msk.f32.mxu0 %vm354_vm1, %v6244_v56  ;;  %v306_v56 = vld [vmem:[%s6110_s21 + $0xd8] sm:$0xff] }
  0x8f   : > { %v3232_v6 = vld [vmem:[%s6110_s21 + $0x95] sm:$0xff] }
  0x91   : > { %5158 = vmatmul.mubr.msk.f32.gmra.mrb[22].mxu1 %vm354_vm1, %v302_v48  ;;  %5411 = vmatmul.mubr.msk.f32.gmra.mrb[4].mxu0 %vm354_vm1, %v6254_v58  ;;  %v307_v58 = vld [vmem:[%s6110_s21 + $0xe0] sm:$0xff]  ;;  %v6777_v48 = vld [vmem:[%s6110_s21 + $0x10a] sm:$0xff] }
  0x92   : > { %5160 = vmatprep.mubr.msk.f32.mxu1 %vm354_vm1, %v303_v50  ;;  %5413 = vmatprep.mubr.msk.f32.mxu0 %vm354_vm1, %v6258_v60  ;;  %v308_v60 = vld [vmem:[%s6110_s21 + $0xe8] sm:$0xff]  ;;  %v3233_v50 = vld [vmem:[%s6110_s21 + $0x9d] sm:$0xff] }
  0x95   : > { %5161 = vmatmul.mubr.msk.f32.gmra.mrb[24].mxu1 %vm354_vm1, %v304_v52  ;;  %5414 = vmatmul.mubr.msk.f32.gmra.mrb[6].mxu0 %vm354_vm1, %v6268_v62  ;;  %v309_v62 = vld [vmem:[%s6110_s21 + $0xf0] sm:$0xff] }
  0x96   : > { %5163 = vmatprep.mubr.msk.f32.mxu1 %vm354_vm1, %v305_v54  ;;  %5416 = vmatprep.mubr.msk.f32.mxu0 %vm354_vm1, %v6272_v0  ;;  %v310_v0 = vld [vmem:[%s6110_s21 + $0xf8] sm:$0xff]  ;;  %v3234_v54 = vld [vmem:[%s6110_s21 + $0xa5] sm:$0xff] }
  0x97   : > { %v6781_v52 = vld [vmem:[%s6110_s21 + $0x112] sm:$0xff] }
  0x99   : > { %5164 = vmatmul.mubr.msk.f32.gmra.mrb[26].mxu1 %vm354_vm1, %v306_v56  ;;  %5417 = vmatmul.mubr.msk.f32.gmra.mrb[8].mxu0 %vm354_vm1, %v6282_v3  ;;  %v311_v3 = vld [vmem:[%s6110_s21 + $0x100] sm:$0xff] }
  0x9a   : > { %5166 = vmatprep.mubr.msk.f32.mxu1 %vm354_vm1, %v307_v58  ;;  %5419 = vmatprep.mubr.msk.f32.mxu0 %vm354_vm1, %v6286_v5  ;;  %v312_v5 = vld [vmem:[%s6110_s21 + $0x108] sm:$0xff]  ;;  %v6791_v56 = vld [vmem:[%s6110_s21 + $0x11a] sm:$0xff] }
  0x9b   : > { %v3235_v58 = vld [vmem:[%s6110_s21 + $0xad] sm:$0xff] }
  0x9d   : > { %5167 = vmatmul.mubr.msk.f32.gmra.mrb[28].mxu1 %vm354_vm1, %v308_v60  ;;  %5420 = vmatmul.mubr.msk.f32.gmra.mrb[10].mxu0 %vm354_vm1, %v6296_v7  ;;  %v313_v7 = vld [vmem:[%s6110_s21 + $0x110] sm:$0xff] }
  0x9e   : > { %5169 = vmatprep.mubr.msk.f32.mxu1 %vm354_vm1, %v309_v62  ;;  %5422 = vmatprep.mubr.msk.f32.mxu0 %vm354_vm1, %v6300_v9  ;;  %v1068_v9 = vld [vmem:[%s6110_s21 + $0x2] sm:$0xff]  ;;  %v3236_v60 = vld [vmem:[%s6110_s21 + $0xb5] sm:$0xff] }
  0x9f   : > { %v3237_v62 = vld [vmem:[%s6110_s21 + $0xbd] sm:$0xff] }
  0xa1   : > { %5170 = vmatmul.mubr.msk.f32.gmra.mrb[30].mxu1 %vm354_vm1, %v310_v0  ;;  %5423 = vmatmul.mubr.msk.f32.gmra.mrb[12].mxu0 %vm354_vm1, %v6310_v12  ;;  %v6551_v12 = vld [vmem:[%s6110_s21 + $0x12] sm:$0xff]  ;;  %v3238_v0 = vld [vmem:[%s6110_s21 + $0xc5] sm:$0xff] }
  0xa2   : > { %5172 = vmatprep.mubr.msk.f32.mxu1 %vm354_vm1, %v311_v3  ;;  %5425 = vmatprep.mubr.msk.f32.mxu0 %vm354_vm1, %v6314_v14  ;;  %v6566_v14 = vld [vmem:[%s6110_s21 + $0x22] sm:$0xff]  ;;  %v3239_v3 = vld [vmem:[%s6110_s21 + $0xcd] sm:$0xff] }
  0xa5   : > { %5173 = vmatmul.mubr.msk.f32.gmra.mrb[32].mxu1 %vm354_vm1, %v312_v5  ;;  %5426 = vmatmul.mubr.msk.f32.gmra.mrb[14].mxu0 %vm354_vm1, %v6324_v16  ;;  %v6582_v16 = vld [vmem:[%s6110_s21 + $0x32] sm:$0xff] }
  0xa6   : > { %5175 = vmatprep.mubr.msk.f32.mxu1 %vm354_vm1, %v313_v7  ;;  %5428 = vmatprep.mubr.msk.f32.mxu0 %vm354_vm1, %v6328_v18  ;;  %v6596_v18 = vld [vmem:[%s6110_s21 + $0x42] sm:$0xff]  ;;  %v3240_v5 = vld [vmem:[%s6110_s21 + $0xd5] sm:$0xff] }
  0xa7   : > { %v3242_v7 = vld [vmem:[%s6110_s21 + $0xe5] sm:$0xff] }
  0xa9   : > { %5176 = vmatmul.mubr.msk.f32.gmra.mrb[34].mxu1 %vm354_vm1, %v314_v8  ;;  %5429 = vmatmul.mubr.msk.f32.gmra.mrb[16].mxu0 %vm354_vm1, %v6338_v20  ;;  %v6610_v20 = vld [vmem:[%s6110_s21 + $0x52] sm:$0xff] }
  0xaa   : > { %5180 = vmatprep.mubr.msk.f32.mxu1 %vm354_vm1, %v1068_v9  ;;  %5431 = vmatprep.mubr.msk.f32.mxu0 %vm354_vm1, %v6342_v22  ;;  %v6624_v22 = vld [vmem:[%s6110_s21 + $0x62] sm:$0xff]  ;;  %v3243_v8 = vld [vmem:[%s6110_s21 + $0xed] sm:$0xff]  ;;  %v3244_v9 = vld [vmem:[%s6110_s21 + $0xf5] sm:$0xff] }
  0xad   : > { %5181 = vmatmul.mubr.msk.f32.vlgmr.msra.gmra.mrb[0].mxu1 %vm354_vm1, %v1069_v10  ;;  %5432 = vmatmul.mubr.msk.f32.gmra.mrb[18].mxu0 %vm354_vm1, %v6357_v25  ;;  %v6649_v25 = vld [vmem:[%s6110_s21 + $0x7a] sm:$0xff] }
  0xae   : > { %5235 = vmatpush3.msk.msra.mxu1 %vm463_vm0, %v6347_v23  ;;  %5183 = vmatprep.mubr.msk.f32.mxu1 %vm354_vm1, %v6551_v12  ;;  %v6635_v23 = vld [vmem:[%s6110_s21 + $0x6a] sm:$0xff]  ;;  %v3245_v10 = vld [vmem:[%s6110_s21 + $0xfd] sm:$0xff] }
  0xaf   : > { %5434 = vmatprep.mubr.msk.f32.mxu0 %vm354_vm1, %v6363_v27  ;;  %5570 = vmatprep.subr.msk.mxu1 %vm463_vm0, %v6089_v1  ;;  %v2822_v27 = vld [vmem:[%s6110_s21 + $0x134] sm:$0xff] }
  0xb1   : > { %5184 = vmatmul.mubr.msk.f32.gmra.mrb[2].mxu1 %vm354_vm1, %v6561_v13  ;;  %5435 = vmatmul.mubr.msk.f32.gmra.mrb[20].mxu0 %vm354_vm1, %v6375_v28  ;;  %v2823_v28 = vld [vmem:[%s6110_s21 + $0x13c] sm:$0xff] }
  0xb2   : > { %5186 = vmatprep.mubr.msk.f32.mxu1 %vm354_vm1, %v6566_v14  ;;  %5437 = vmatprep.mubr.msk.f32.mxu0 %vm354_vm1, %v6379_v30  ;;  %v3218_v30 = vld [vmem:[%s6110_s21 + $0x25] sm:$0xff] }
  0xb5   : > { %5187 = vmatmul.mubr.msk.f32.gmra.mrb[4].mxu1 %vm354_vm1, %v6579_v15  ;;  %5438 = vmatmul.mubr.msk.f32.gmra.mrb[22].mxu0 %vm354_vm1, %v6389_v32  ;;  %v3219_v32 = vld [vmem:[%s6110_s21 + $0x2d] sm:$0xff] }
  0xb6   : > { %5189 = vmatprep.mubr.msk.f32.mxu1 %vm354_vm1, %v6582_v16  ;;  %5440 = vmatprep.mubr.msk.f32.mxu0 %vm354_vm1, %v6393_v34  ;;  %v3220_v34 = vld [vmem:[%s6110_s21 + $0x35] sm:$0xff] }
  0xb9   : > { %5190 = vmatmul.mubr.msk.f32.gmra.mrb[6].mxu1 %vm354_vm1, %v6593_v17  ;;  %5441 = vmatmul.mubr.msk.f32.gmra.mrb[24].mxu0 %vm354_vm1, %v6403_v36  ;;  %v3221_v36 = vld [vmem:[%s6110_s21 + $0x3d] sm:$0xff] }
  0xba   : > { %5192 = vmatprep.mubr.msk.f32.mxu1 %vm354_vm1, %v6596_v18  ;;  %5443 = vmatprep.mubr.msk.f32.mxu0 %vm354_vm1, %v6407_v38  ;;  %v3222_v38 = vld [vmem:[%s6110_s21 + $0x45] sm:$0xff] }
  0xbd   : > { %5193 = vmatmul.mubr.msk.f32.gmra.mrb[8].mxu1 %vm354_vm1, %v6607_v19  ;;  %5444 = vmatmul.mubr.msk.f32.gmra.mrb[26].mxu0 %vm354_vm1, %v6417_v40  ;;  %v3223_v40 = vld [vmem:[%s6110_s21 + $0x4d] sm:$0xff] }
  0xbe   : > { %5195 = vmatprep.mubr.msk.f32.mxu1 %vm354_vm1, %v6610_v20  ;;  %5446 = vmatprep.mubr.msk.f32.mxu0 %vm354_vm1, %v6421_v42  ;;  %v3224_v42 = vld [vmem:[%s6110_s21 + $0x55] sm:$0xff] }
  0xc1   : > { %5196 = vmatmul.mubr.msk.f32.gmra.mrb[10].mxu1 %vm354_vm1, %v6621_v21  ;;  %5447 = vmatmul.mubr.msk.f32.gmra.mrb[28].mxu0 %vm354_vm1, %v6431_v44  ;;  %v3225_v44 = vld [vmem:[%s6110_s21 + $0x5d] sm:$0xff] }
  0xc2   : > { %5198 = vmatprep.mubr.msk.f32.mxu1 %vm354_vm1, %v6624_v22  ;;  %5449 = vmatprep.mubr.msk.f32.mxu0 %vm354_vm1, %v6435_v46  ;;  %v3226_v46 = vld [vmem:[%s6110_s21 + $0x65] sm:$0xff] }
  0xc5   : > { %5199 = vmatmul.mubr.msk.f32.gmra.mrb[12].mxu1 %vm354_vm1, %v6635_v23  ;;  %5450 = vmatmul.mubr.msk.f32.gmra.mrb[30].mxu0 %vm354_vm1, %v6445_v51  ;;  %v3227_v51 = vld [vmem:[%s6110_s21 + $0x6d] sm:$0xff] }
  0xc6   : > { %5201 = vmatprep.mubr.msk.f32.mxu1 %vm354_vm1, %v6638_v24  ;;  %5452 = vmatprep.mubr.msk.f32.mxu0 %vm354_vm1, %v6449_v55  ;;  %v3228_v55 = vld [vmem:[%s6110_s21 + $0x75] sm:$0xff] }
  0xc9   : > { %5202 = vmatmul.mubr.msk.f32.gmra.mrb[14].mxu1 %vm354_vm1, %v6649_v25  ;;  %5453 = vmatmul.mubr.msk.f32.gmra.mrb[32].mxu0 %vm354_vm1, %v6459_v59  ;;  %v3229_v59 = vld [vmem:[%s6110_s21 + $0x7d] sm:$0xff] }
  0xca   : > { %5204 = vmatprep.mubr.msk.f32.mxu1 %vm354_vm1, %v6652_v26  ;;  %5455 = vmatprep.mubr.msk.f32.mxu0 %vm354_vm1, %v2822_v27  ;;  %v3655_v27 = vld [vmem:[%s6110_s21 + $0x5e] sm:$0xff] }
  0xcd   : > { %5205 = vmatmul.mubr.msk.f32.gmra.mrb[16].mxu1 %vm354_vm1, %v6663_v11  ;;  %5456 = vmatmul.mubr.msk.f32.gmra.mrb[34].mxu0 %vm354_vm1, %v2823_v28  ;;  %v3657_v28 = vld [vmem:[%s6110_s21 + $0x6e] sm:$0xff] }
  0xce   : > { %5207 = vmatprep.mubr.msk.f32.mxu1 %vm354_vm1, %v6667_v29  ;;  %5460 = vmatprep.mubr.msk.f32.mxu0 %vm354_vm1, %v3218_v30  ;;  %v3659_v30 = vld [vmem:[%s6110_s21 + $0x7e] sm:$0xff] }
  0xd1   : > { %5208 = vmatmul.mubr.msk.f32.gmra.mrb[18].mxu1 %vm354_vm1, %v6677_v31  ;;  %5461 = vmatmul.mubr.msk.f32.vlgmr.msra.gmra.mrb[0].mxu0 %vm354_vm1, %v3219_v32  ;;  %v3661_v32 = vld [vmem:[%s6110_s21 + $0x8e] sm:$0xff] }
  0xd2   : > { %5515 = vmatpush3.msk.msra.mxu0 %vm463_vm0, %v6473_v4  ;;  %5210 = vmatprep.mubr.msk.f32.mxu1 %vm354_vm1, %v6681_v33  ;;  %v3231_v4 = vld [vmem:[%s6110_s21 + $0x8d] sm:$0xff] }
  0xd3   : > { %5463 = vmatprep.mubr.msk.f32.mxu0 %vm354_vm1, %v3220_v34  ;;  %v3663_v34 = vld [vmem:[%s6110_s21 + $0x9e] sm:$0xff] }
  0xd5   : > { %5211 = vmatmul.mubr.msk.f32.gmra.mrb[20].mxu1 %vm354_vm1, %v6692_v35  ;;  %5464 = vmatmul.mubr.msk.f32.gmra.mrb[2].mxu0 %vm354_vm1, %v3221_v36  ;;  %v3664_v36 = vld [vmem:[%s6110_s21 + $0xa6] sm:$0xff] }
  0xd6   : > { %5213 = vmatprep.mubr.msk.f32.mxu1 %vm354_vm1, %v6697_v37  ;;  %5466 = vmatprep.mubr.msk.f32.mxu0 %vm354_vm1, %v3222_v38  ;;  %v3665_v38 = vld [vmem:[%s6110_s21 + $0xae] sm:$0xff] }
  0xd9   : > { %5214 = vmatmul.mubr.msk.f32.gmra.mrb[22].mxu1 %vm354_vm1, %v6707_v39  ;;  %5467 = vmatmul.mubr.msk.f32.gmra.mrb[4].mxu0 %vm354_vm1, %v3223_v40  ;;  %v3666_v40 = vld [vmem:[%s6110_s21 + $0xb6] sm:$0xff] }
  0xda   : > { %5216 = vmatprep.mubr.msk.f32.mxu1 %vm354_vm1, %v6711_v41  ;;  %5469 = vmatprep.mubr.msk.f32.mxu0 %vm354_vm1, %v3224_v42  ;;  %v3667_v42 = vld [vmem:[%s6110_s21 + $0xbe] sm:$0xff] }
  0xdd   : > { %5217 = vmatmul.mubr.msk.f32.gmra.mrb[24].mxu1 %vm354_vm1, %v6721_v43  ;;  %5470 = vmatmul.mubr.msk.f32.gmra.mrb[6].mxu0 %vm354_vm1, %v3225_v44  ;;  %v3668_v44 = vld [vmem:[%s6110_s21 + $0xc6] sm:$0xff] }
  0xde   : > { %5219 = vmatprep.mubr.msk.f32.mxu1 %vm354_vm1, %v6725_v45  ;;  %5472 = vmatprep.mubr.msk.f32.mxu0 %vm354_vm1, %v3226_v46  ;;  %v3669_v46 = vld [vmem:[%s6110_s21 + $0xce] sm:$0xff] }
  0xe1   : > { %5220 = vmatmul.mubr.msk.f32.gmra.mrb[26].mxu1 %vm354_vm1, %v6735_v49  ;;  %5473 = vmatmul.mubr.msk.f32.gmra.mrb[8].mxu0 %vm354_vm1, %v3227_v51  ;;  %v3670_v51 = vld [vmem:[%s6110_s21 + $0xd6] sm:$0xff] }
  0xe2   : > { %5222 = vmatprep.mubr.msk.f32.mxu1 %vm354_vm1, %v6739_v53  ;;  %5475 = vmatprep.mubr.msk.f32.mxu0 %vm354_vm1, %v3228_v55  ;;  %v3671_v55 = vld [vmem:[%s6110_s21 + $0xde] sm:$0xff] }
  0xe5   : > { %5223 = vmatmul.mubr.msk.f32.gmra.mrb[28].mxu1 %vm354_vm1, %v6749_v57  ;;  %5476 = vmatmul.mubr.msk.f32.gmra.mrb[10].mxu0 %vm354_vm1, %v3229_v59  ;;  %v3672_v59 = vld [vmem:[%s6110_s21 + $0xe6] sm:$0xff] }
  0xe6   : > { %5225 = vmatprep.mubr.msk.f32.mxu1 %vm354_vm1, %v6753_v61  ;;  %5478 = vmatprep.mubr.msk.f32.mxu0 %vm354_vm1, %v3230_v63  ;;  %v3673_v63 = vld [vmem:[%s6110_s21 + $0xee] sm:$0xff] }
  0xe9   : > { %5226 = vmatmul.mubr.msk.f32.gmra.mrb[30].mxu1 %vm354_vm1, %v6763_v2  ;;  %5479 = vmatmul.mubr.msk.f32.gmra.mrb[12].mxu0 %vm354_vm1, %v3231_v4  ;;  %v3674_v4 = vld [vmem:[%s6110_s21 + $0xf6] sm:$0xff] }
  0xea   : > { %5228 = vmatprep.mubr.msk.f32.mxu1 %vm354_vm1, %v6767_v47  ;;  %5481 = vmatprep.mubr.msk.f32.mxu0 %vm354_vm1, %v3232_v6  ;;  %v3675_v6 = vld [vmem:[%s6110_s21 + $0xfe] sm:$0xff] }
  0xed   : > { %5229 = vmatmul.mubr.msk.f32.gmra.mrb[32].mxu1 %vm354_vm1, %v6777_v48  ;;  %5482 = vmatmul.mubr.msk.f32.gmra.mrb[14].mxu0 %vm354_vm1, %v3233_v50  ;;  %v3676_v50 = vld [vmem:[%s6110_s21 + $0x106] sm:$0xff] }
  0xee   : > { %5231 = vmatprep.mubr.msk.f32.mxu1 %vm354_vm1, %v6781_v52  ;;  %5484 = vmatprep.mubr.msk.f32.mxu0 %vm354_vm1, %v3234_v54  ;;  %v3677_v54 = vld [vmem:[%s6110_s21 + $0x10e] sm:$0xff] }
  0xf1   : > { %5232 = vmatmul.mubr.msk.f32.gmra.mrb[34].mxu1 %vm354_vm1, %v6791_v56  ;;  %5485 = vmatmul.mubr.msk.f32.gmra.mrb[16].mxu0 %vm354_vm1, %v3235_v58  ;;  %v3678_v58 = vld [vmem:[%s6110_s21 + $0x116] sm:$0xff] }
  0xf2   : > { %5236 = vmatprep.mubr.msk.f32.mxu1 %vm354_vm1, %v6551_v12  ;;  %5487 = vmatprep.mubr.msk.f32.mxu0 %vm354_vm1, %v3236_v60  ;;  %v3246_v12 = vld [vmem:[%s6110_s21 + $0x105] sm:$0xff] }
  0xf3   : > { %v1959_v60 = vld [vmem:[%s6110_s21 + $0x10b] sm:$0xff] }
  0xf5   : > { %5237 = vmatmul.mubr.msk.f32.vlgmr.msra.gmra.mrb[0].mxu1 %vm354_vm1, %v6561_v13  ;;  %5488 = vmatmul.mubr.msk.f32.gmra.mrb[18].mxu0 %vm354_vm1, %v3237_v62  ;;  %v3247_v13 = vld [vmem:[%s6110_s21 + $0x10d] sm:$0xff]  ;;  %v3679_v62 = vld [vmem:[%s6110_s21 + $0x11e] sm:$0xff] }
  0xf6   : > { %5571 = vmatpush3.msk.msra.mxu1 %vm463_vm0, %v6089_v1  ;;  %5239 = vmatprep.mubr.msk.f32.mxu1 %vm354_vm1, %v6566_v14  ;;  %v3241_v1 = vld [vmem:[%s6110_s21 + $0xdd] sm:$0xff]  ;;  %v3248_v14 = vld [vmem:[%s6110_s21 + $0x115] sm:$0xff] }
  0xf7   : > { %5490 = vmatprep.mubr.msk.f32.mxu0 %vm354_vm1, %v3238_v0  ;;  %v1960_v0 = vld [vmem:[%s6110_s21 + $0x113] sm:$0xff] }
  0xf9   : > { %5240 = vmatmul.mubr.msk.f32.gmra.mrb[2].mxu1 %vm354_vm1, %v6579_v15  ;;  %5491 = vmatmul.mubr.msk.f32.gmra.mrb[20].mxu0 %vm354_vm1, %v3239_v3  ;;  %v3249_v15 = vld [vmem:[%s6110_s21 + $0x11d] sm:$0xff]  ;;  %v3680_v3 = vld [vmem:[%s6110_s21 + $0x126] sm:$0xff] }
  0xfa   : > { %5242 = vmatprep.mubr.msk.f32.mxu1 %vm354_vm1, %v6582_v16  ;;  %5493 = vmatprep.mubr.msk.f32.mxu0 %vm354_vm1, %v3240_v5  ;;  %v3250_v16 = vld [vmem:[%s6110_s21 + $0x125] sm:$0xff]  ;;  %v1961_v5 = vld [vmem:[%s6110_s21 + $0x11b] sm:$0xff] }
  0xfd   : > { %5243 = vmatmul.mubr.msk.f32.gmra.mrb[4].mxu1 %vm354_vm1, %v6593_v17  ;;  %5494 = vmatmul.mubr.msk.f32.gmra.mrb[22].mxu0 %vm354_vm1, %v3241_v1  ;;  %v3251_v17 = vld [vmem:[%s6110_s21 + $0x12d] sm:$0xff] }
  0xfe   : > { %5245 = vmatprep.mubr.msk.f32.mxu1 %vm354_vm1, %v6596_v18  ;;  %5496 = vmatprep.mubr.msk.f32.mxu0 %vm354_vm1, %v3242_v7  ;;  %v3252_v18 = vld [vmem:[%s6110_s21 + $0x135] sm:$0xff]  ;;  %v1962_v7 = vld [vmem:[%s6110_s21 + $0x123] sm:$0xff] }
  0xff   : > { %v3681_v1 = vld [vmem:[%s6110_s21 + $0x12e] sm:$0xff] }
 0x101   : > { %5246 = vmatmul.mubr.msk.f32.gmra.mrb[6].mxu1 %vm354_vm1, %v6607_v19  ;;  %5497 = vmatmul.mubr.msk.f32.gmra.mrb[24].mxu0 %vm354_vm1, %v3243_v8  ;;  %v3253_v19 = vld [vmem:[%s6110_s21 + $0x13d] sm:$0xff] }
 0x102   : > { %5248 = vmatprep.mubr.msk.f32.mxu1 %vm354_vm1, %v6610_v20  ;;  %5499 = vmatprep.mubr.msk.f32.mxu0 %vm354_vm1, %v3244_v9  ;;  %v3648_v20 = vld [vmem:[%s6110_s21 + $0x26] sm:$0xff]  ;;  %v3682_v8 = vld [vmem:[%s6110_s21 + $0x136] sm:$0xff] }
 0x103   : > { %v1963_v9 = vld [vmem:[%s6110_s21 + $0x12b] sm:$0xff] }
 0x105   : > { %5249 = vmatmul.mubr.msk.f32.gmra.mrb[8].mxu1 %vm354_vm1, %v6621_v21  ;;  %5500 = vmatmul.mubr.msk.f32.gmra.mrb[26].mxu0 %vm354_vm1, %v3245_v10  ;;  %v3649_v21 = vld [vmem:[%s6110_s21 + $0x2e] sm:$0xff]  ;;  %v3683_v10 = vld [vmem:[%s6110_s21 + $0x13e] sm:$0xff] }
 0x106   : > { %5251 = vmatprep.mubr.msk.f32.mxu1 %vm354_vm1, %v6624_v22  ;;  %5502 = vmatprep.mubr.msk.f32.mxu0 %vm354_vm1, %v3246_v12  ;;  %v3650_v22 = vld [vmem:[%s6110_s21 + $0x36] sm:$0xff] }
 0x109   : > { %5252 = vmatmul.mubr.msk.f32.gmra.mrb[10].mxu1 %vm354_vm1, %v6635_v23  ;;  %5503 = vmatmul.mubr.msk.f32.gmra.mrb[28].mxu0 %vm354_vm1, %v3247_v13  ;;  %v3651_v23 = vld [vmem:[%s6110_s21 + $0x3e] sm:$0xff] }
 0x10a   : > { %5254 = vmatprep.mubr.msk.f32.mxu1 %vm354_vm1, %v6638_v24  ;;  %5505 = vmatprep.mubr.msk.f32.mxu0 %vm354_vm1, %v3248_v14  ;;  %v3652_v24 = vld [vmem:[%s6110_s21 + $0x46] sm:$0xff] }
 0x10d   : > { %5255 = vmatmul.mubr.msk.f32.gmra.mrb[12].mxu1 %vm354_vm1, %v6649_v25  ;;  %5506 = vmatmul.mubr.msk.f32.gmra.mrb[30].mxu0 %vm354_vm1, %v3249_v15  ;;  %v3653_v25 = vld [vmem:[%s6110_s21 + $0x4e] sm:$0xff] }
 0x10e   : > { %5257 = vmatprep.mubr.msk.f32.mxu1 %vm354_vm1, %v6652_v26  ;;  %5508 = vmatprep.mubr.msk.f32.mxu0 %vm354_vm1, %v3250_v16  ;;  %v3654_v26 = vld [vmem:[%s6110_s21 + $0x56] sm:$0xff] }
 0x111   : > { %5258 = vmatmul.mubr.msk.f32.gmra.mrb[14].mxu1 %vm354_vm1, %v6663_v11  ;;  %5509 = vmatmul.mubr.msk.f32.gmra.mrb[32].mxu0 %vm354_vm1, %v3251_v17  ;;  %v3656_v11 = vld [vmem:[%s6110_s21 + $0x66] sm:$0xff] }
 0x112   : > { %5260 = vmatprep.mubr.msk.f32.mxu1 %vm354_vm1, %v6667_v29  ;;  %5511 = vmatprep.mubr.msk.f32.mxu0 %vm354_vm1, %v3252_v18  ;;  %v3658_v29 = vld [vmem:[%s6110_s21 + $0x76] sm:$0xff] }
 0x115   : > { %5261 = vmatmul.mubr.msk.f32.gmra.mrb[16].mxu1 %vm354_vm1, %v6677_v31  ;;  %5512 = vmatmul.mubr.msk.f32.gmra.mrb[34].mxu0 %vm354_vm1, %v3253_v19  ;;  %v3660_v31 = vld [vmem:[%s6110_s21 + $0x86] sm:$0xff] }
 0x116   : > { %5263 = vmatprep.mubr.msk.f32.mxu1 %vm354_vm1, %v6681_v33  ;;  %5516 = vmatprep.mubr.msk.f32.mxu0 %vm354_vm1, %v3648_v20  ;;  %v3662_v33 = vld [vmem:[%s6110_s21 + $0x96] sm:$0xff] }
 0x119   : > { %5264 = vmatmul.mubr.msk.f32.gmra.mrb[18].mxu1 %vm354_vm1, %v6692_v35  ;;  %5517 = vmatmul.mubr.msk.f32.vlgmr.msra.gmra.mrb[0].mxu0 %vm354_vm1, %v3649_v21  ;;  %v1532_v35 = vld [vmem:[%s6110_s21 + $0x122] sm:$0xff] }
 0x11a   : > { %5266 = vmatprep.mubr.msk.f32.mxu1 %vm354_vm1, %v6697_v37  ;;  %5519 = vmatprep.mubr.msk.f32.mxu0 %vm354_vm1, %v3650_v22  ;;  %v1533_v37 = vld [vmem:[%s6110_s21 + $0x12a] sm:$0xff] }
 0x11d   : > { %5267 = vmatmul.mubr.msk.f32.gmra.mrb[20].mxu1 %vm354_vm1, %v6707_v39  ;;  %5520 = vmatmul.mubr.msk.f32.gmra.mrb[2].mxu0 %vm354_vm1, %v3651_v23  ;;  %v1946_v39 = vld [vmem:[%s6110_s21 + $0xa3] sm:$0xff] }
 0x11e   : > { %5269 = vmatprep.mubr.msk.f32.mxu1 %vm354_vm1, %v6711_v41  ;;  %5522 = vmatprep.mubr.msk.f32.mxu0 %vm354_vm1, %v3652_v24  ;;  %v1947_v41 = vld [vmem:[%s6110_s21 + $0xab] sm:$0xff] }
 0x121   : > { %5270 = vmatmul.mubr.msk.f32.gmra.mrb[22].mxu1 %vm354_vm1, %v6721_v43  ;;  %5523 = vmatmul.mubr.msk.f32.gmra.mrb[4].mxu0 %vm354_vm1, %v3653_v25  ;;  %v1948_v43 = vld [vmem:[%s6110_s21 + $0xb3] sm:$0xff] }
 0x122   : > { %5272 = vmatprep.mubr.msk.f32.mxu1 %vm354_vm1, %v6725_v45  ;;  %5525 = vmatprep.mubr.msk.f32.mxu0 %vm354_vm1, %v3654_v26  ;;  %v1949_v45 = vld [vmem:[%s6110_s21 + $0xbb] sm:$0xff] }
 0x125   : > { %5273 = vmatmul.mubr.msk.f32.gmra.mrb[24].mxu1 %vm354_vm1, %v6735_v49  ;;  %5526 = vmatmul.mubr.msk.f32.gmra.mrb[6].mxu0 %vm354_vm1, %v3655_v27  ;;  %v1950_v49 = vld [vmem:[%s6110_s21 + $0xc3] sm:$0xff] }
 0x126   : > { %5275 = vmatprep.mubr.msk.f32.mxu1 %vm354_vm1, %v6739_v53  ;;  %5528 = vmatprep.mubr.msk.f32.mxu0 %vm354_vm1, %v3656_v11  ;;  %v1951_v53 = vld [vmem:[%s6110_s21 + $0xcb] sm:$0xff] }
 0x129   : > { %5276 = vmatmul.mubr.msk.f32.gmra.mrb[26].mxu1 %vm354_vm1, %v6749_v57  ;;  %5529 = vmatmul.mubr.msk.f32.gmra.mrb[8].mxu0 %vm354_vm1, %v3657_v28  ;;  %v1952_v57 = vld [vmem:[%s6110_s21 + $0xd3] sm:$0xff] }
 0x12a   : > { %5278 = vmatprep.mubr.msk.f32.mxu1 %vm354_vm1, %v6753_v61  ;;  %5531 = vmatprep.mubr.msk.f32.mxu0 %vm354_vm1, %v3658_v29  ;;  %v1953_v61 = vld [vmem:[%s6110_s21 + $0xdb] sm:$0xff] }
 0x12d   : > { %5279 = vmatmul.mubr.msk.f32.gmra.mrb[28].mxu1 %vm354_vm1, %v6763_v2  ;;  %5532 = vmatmul.mubr.msk.f32.gmra.mrb[10].mxu0 %vm354_vm1, %v3659_v30  ;;  %v1954_v2 = vld [vmem:[%s6110_s21 + $0xe3] sm:$0xff]  ;;  %v7035_v30 = vld [vmem:[%s7221_s2] ss:$0 sm:$0xff] }
 0x12e   : > { %5281 = vmatprep.mubr.msk.f32.mxu1 %vm354_vm1, %v6767_v47  ;;  %5534 = vmatprep.mubr.msk.f32.mxu0 %vm354_vm1, %v3660_v31  ;;  %v1955_v47 = vld [vmem:[%s6110_s21 + $0xeb] sm:$0xff] }
 0x131   : > { %5282 = vmatmul.mubr.msk.f32.gmra.mrb[30].mxu1 %vm354_vm1, %v6777_v48  ;;  %5535 = vmatmul.mubr.msk.f32.gmra.mrb[12].mxu0 %vm354_vm1, %v3661_v32  ;;  %v1956_v48 = vld [vmem:[%s6110_s21 + $0xf3] sm:$0xff] }
 0x132   : > { %5284 = vmatprep.mubr.msk.f32.mxu1 %vm354_vm1, %v6781_v52  ;;  %5537 = vmatprep.mubr.msk.f32.mxu0 %vm354_vm1, %v3662_v33  ;;  %v1957_v52 = vld [vmem:[%s6110_s21 + $0xfb] sm:$0xff] }
 0x133   : > { %v7042_v33 = vld [vmem:[%s7222_s3] ss:$0 sm:$0xff] }
 0x135   : > { %5285 = vmatmul.mubr.msk.f32.gmra.mrb[32].mxu1 %vm354_vm1, %v6791_v56  ;;  %5538 = vmatmul.mubr.msk.f32.gmra.mrb[14].mxu0 %vm354_vm1, %v3663_v34  ;;  %v1958_v56 = vld [vmem:[%s6110_s21 + $0x103] sm:$0xff] }
 0x136   : > { %5287 = vmatprep.mubr.msk.f32.mxu1 %vm354_vm1, %v1532_v35  ;;  %5540 = vmatprep.mubr.msk.f32.mxu0 %vm354_vm1, %v3664_v36 }
 0x139   : > { %5288 = vmatmul.mubr.msk.f32.gmra.mrb[34].mxu1 %vm354_vm1, %v1533_v37  ;;  %5541 = vmatmul.mubr.msk.f32.gmra.mrb[16].mxu0 %vm354_vm1, %v3665_v38 }
 0x13a   : > { %5319 = vmatprep.mubr.msk.f32.mxu1 %vm354_vm1, %v1946_v39  ;;  %5543 = vmatprep.mubr.msk.f32.mxu0 %vm354_vm1, %v3666_v40 }
 0x13d   : > { %5320 = vmatmul.mubr.msk.f32.vlgmr.msra.gmra.mrb[18].mxu1 %vm354_vm1, %v1947_v41  ;;  %5544 = vmatmul.mubr.msk.f32.gmra.mrb[18].mxu0 %vm354_vm1, %v3667_v42 }
 0x13e   : > { %5322 = vmatprep.mubr.msk.f32.mxu1 %vm354_vm1, %v1948_v43  ;;  %5546 = vmatprep.mubr.msk.f32.mxu0 %vm354_vm1, %v3668_v44 }
 0x141   : > { %5323 = vmatmul.mubr.msk.f32.gmra.mrb[20].mxu1 %vm354_vm1, %v1949_v45  ;;  %5547 = vmatmul.mubr.msk.f32.gmra.mrb[20].mxu0 %vm354_vm1, %v3669_v46 }
 0x142   : > { %5325 = vmatprep.mubr.msk.f32.mxu1 %vm354_vm1, %v1950_v49  ;;  %5549 = vmatprep.mubr.msk.f32.mxu0 %vm354_vm1, %v3670_v51 }
 0x145   : > { %5326 = vmatmul.mubr.msk.f32.gmra.mrb[22].mxu1 %vm354_vm1, %v1951_v53  ;;  %5550 = vmatmul.mubr.msk.f32.gmra.mrb[22].mxu0 %vm354_vm1, %v3671_v55 }
 0x146   : > { %5328 = vmatprep.mubr.msk.f32.mxu1 %vm354_vm1, %v1952_v57  ;;  %5552 = vmatprep.mubr.msk.f32.mxu0 %vm354_vm1, %v3672_v59 }
 0x149   : > { %5329 = vmatmul.mubr.msk.f32.gmra.mrb[24].mxu1 %vm354_vm1, %v1953_v61  ;;  %5553 = vmatmul.mubr.msk.f32.gmra.mrb[24].mxu0 %vm354_vm1, %v3673_v63 }
 0x14a   : > { %5331 = vmatprep.mubr.msk.f32.mxu1 %vm354_vm1, %v1954_v2  ;;  %5555 = vmatprep.mubr.msk.f32.mxu0 %vm354_vm1, %v3674_v4 }
 0x14d   : > { %5332 = vmatmul.mubr.msk.f32.gmra.mrb[26].mxu1 %vm354_vm1, %v1955_v47  ;;  %5556 = vmatmul.mubr.msk.f32.gmra.mrb[26].mxu0 %vm354_vm1, %v3675_v6 }
 0x14e   : > { %5334 = vmatprep.mubr.msk.f32.mxu1 %vm354_vm1, %v1956_v48  ;;  %5558 = vmatprep.mubr.msk.f32.mxu0 %vm354_vm1, %v3676_v50 }
 0x151   : > { %5335 = vmatmul.mubr.msk.f32.gmra.mrb[28].mxu1 %vm354_vm1, %v1957_v52  ;;  %5559 = vmatmul.mubr.msk.f32.gmra.mrb[28].mxu0 %vm354_vm1, %v3677_v54 }
 0x152   : > { %5337 = vmatprep.mubr.msk.f32.mxu1 %vm354_vm1, %v1958_v56  ;;  %5561 = vmatprep.mubr.msk.f32.mxu0 %vm354_vm1, %v3678_v58 }
 0x155   : > { %5338 = vmatmul.mubr.msk.f32.gmra.mrb[30].mxu1 %vm354_vm1, %v1959_v60  ;;  %5562 = vmatmul.mubr.msk.f32.gmra.mrb[30].mxu0 %vm354_vm1, %v3679_v62 }
 0x156   : > { %5340 = vmatprep.mubr.msk.f32.mxu1 %vm354_vm1, %v1960_v0  ;;  %5564 = vmatprep.mubr.msk.f32.mxu0 %vm354_vm1, %v3680_v3 }
 0x159   : > { %5341 = vmatmul.mubr.msk.f32.gmra.mrb[32].mxu1 %vm354_vm1, %v1961_v5  ;;  %5565 = vmatmul.mubr.msk.f32.gmra.mrb[32].mxu0 %vm354_vm1, %v3681_v1 }
 0x15a   : > { %5343 = vmatprep.mubr.msk.f32.mxu1 %vm354_vm1, %v1962_v7  ;;  %5567 = vmatprep.mubr.msk.f32.mxu0 %vm354_vm1, %v3682_v8 }
 0x15d   : > { %5344 = vmatmul.mubr.msk.f32.gmra.mrb[34].mxu1 %vm354_vm1, %v1963_v9  ;;  %5568 = vmatmul.mubr.msk.f32.gmra.mrb[34].mxu0 %vm354_vm1, %v3683_v10 }
 0x1c8   : > { %v5238_v12 = vpop.f32.mrb[0].mxu1 }
 0x1c9   : > { %v1713_v13 = vpop.f32.mrb[1].mxu1 }
 0x1cc   : > { %v5241_v14 = vpop.f32.mrb[2].mxu1 }
 0x1cd   : > { %v1723_v15 = vpop.f32.mrb[3].mxu1 }
 0x1d0   : > { %v5244_v16 = vpop.f32.mrb[4].mxu1 }
 0x1d1   : > { %v1733_v17 = vpop.f32.mrb[5].mxu1 }
 0x1d4   : > { %v5247_v18 = vpop.f32.mrb[6].mxu1 }
 0x1d5   : > { %v1743_v19 = vpop.f32.mrb[7].mxu1 }
 0x1d8   : > { %v5250_v20 = vpop.f32.mrb[8].mxu1 }
 0x1d9   : > { %v1753_v21 = vpop.f32.mrb[9].mxu1 }
 0x1dc   : > { %v7015_v22 = vpop.f32.mrb[10].mxu1 }
 0x1dd   : > { %v7017_v23 = vpop.f32.mrb[11].mxu1 }
 0x1e0   : > { %v7019_v24 = vpop.f32.mrb[12].mxu1 }
 0x1e1   : > { %v7021_v25 = vpop.f32.mrb[13].mxu1 }
 0x1e4   : > { %v7023_v26 = vpop.f32.mrb[14].mxu1 }
 0x1e5   : > { %v7025_v27 = vpop.f32.mrb[15].mxu1 }
 0x1e8   : > { %v7027_v11 = vpop.f32.mrb[16].mxu1 }
 0x1e9   : > { %v7029_v28 = vpop.f32.mrb[17].mxu1 }
 0x1ec   : > { %v5518_v29 = vpop.f32.mrb[0].mxu0 }
 0x1ed   : > { %v5572_v31 = vadd.f32 %v5518_v29, %v5238_v12  ;;  %v3863_v32 = vpop.f32.mrb[1].mxu0 }
 0x1ee   : > { %v5573_v34 = vadd.f32 %v3863_v32, %v1713_v13 }
 0x1ef   : > { %v4086_v35 = vmul.f32 %v5572_v31, %v7035_v30 }
 0x1f0   : > { %v4085_v36 = vmul.f32 %v5573_v34, %v7035_v30  ;;  %v5521_v37 = vpop.f32.mrb[2].mxu0 }
 0x1f1   : > { %v4129_v38 = vadd.f32 %v7042_v33, %v4086_v35  ;;  %v5574_v39 = vadd.f32 %v5521_v37, %v5241_v14  ;;  %v3873_v40 = vpop.f32.mrb[3].mxu0 }
 0x1f2   : > { %v4128_v41 = vadd.f32 %v7042_v33, %v4085_v36  ;;  %v5575_v42 = vadd.f32 %v3873_v40, %v1723_v15 }
 0x1f3   : > { %v4165_v43 = vmax.f32 %v4129_v38, 0.0  ;;  %v4088_v44 = vmul.f32 %v5574_v39, %v7035_v30 }
 0x1f4   : > { %v4164_v45 = vmax.f32 %v4128_v41, 0.0  ;;  %v4087_v46 = vmul.f32 %v5575_v42, %v7035_v30  ;;  %v5524_v49 = vpop.f32.mrb[4].mxu0 }
 0x1f5   : > { %4201 = vst [vmem:[%s7050_s22 + $0x8] sm:$0xff] %v4165_v43  ;;  %v4131_v51 = vadd.f32 %v7042_v33, %v4088_v44  ;;  %v5576_v53 = vadd.f32 %v5524_v49, %v5244_v16  ;;  %v3883_v55 = vpop.f32.mrb[5].mxu0 }
 0x1f6   : > { %4200 = vst [vmem:[%s7050_s22] sm:$0xff] %v4164_v45  ;;  %v4130_v57 = vadd.f32 %v7042_v33, %v4087_v46  ;;  %v5577_v59 = vadd.f32 %v3883_v55, %v1733_v17 }
 0x1f7   : > { %v4167_v61 = vmax.f32 %v4131_v51, 0.0  ;;  %v4090_v63 = vmul.f32 %v5576_v53, %v7035_v30 }
 0x1f8   : > { %v4166_v2 = vmax.f32 %v4130_v57, 0.0  ;;  %v4089_v4 = vmul.f32 %v5577_v59, %v7035_v30  ;;  %v5527_v47 = vpop.f32.mrb[6].mxu0 }
 0x1f9   : > { %4203 = vst [vmem:[%s7050_s22 + $0x18] sm:$0xff] %v4167_v61  ;;  %v4133_v6 = vadd.f32 %v7042_v33, %v4090_v63  ;;  %v5578_v48 = vadd.f32 %v5527_v47, %v5247_v18  ;;  %v3893_v50 = vpop.f32.mrb[7].mxu0 }
 0x1fa   : > { %4202 = vst [vmem:[%s7050_s22 + $0x10] sm:$0xff] %v4166_v2  ;;  %v4132_v52 = vadd.f32 %v7042_v33, %v4089_v4  ;;  %v5579_v54 = vadd.f32 %v3893_v50, %v1743_v19 }
 0x1fb   : > { %v4169_v56 = vmax.f32 %v4133_v6, 0.0  ;;  %v4092_v58 = vmul.f32 %v5578_v48, %v7035_v30 }
 0x1fc   : > { %v4168_v60 = vmax.f32 %v4132_v52, 0.0  ;;  %v4091_v62 = vmul.f32 %v5579_v54, %v7035_v30  ;;  %v5530_v0 = vpop.f32.mrb[8].mxu0 }
 0x1fd   : > { %4205 = vst [vmem:[%s7050_s22 + $0x28] sm:$0xff] %v4169_v56  ;;  %v4135_v3 = vadd.f32 %v7042_v33, %v4092_v58  ;;  %v5580_v5 = vadd.f32 %v5530_v0, %v5250_v20  ;;  %v3903_v1 = vpop.f32.mrb[9].mxu0 }
 0x1fe   : > { %4204 = vst [vmem:[%s7050_s22 + $0x20] sm:$0xff] %v4168_v60  ;;  %v4134_v7 = vadd.f32 %v7042_v33, %v4091_v62  ;;  %v5581_v8 = vadd.f32 %v3903_v1, %v1753_v21 }
 0x1ff   : > { %v4171_v9 = vmax.f32 %v4135_v3, 0.0  ;;  %v4094_v10 = vmul.f32 %v5580_v5, %v7035_v30 }
 0x200   : > { %v4170_v12 = vmax.f32 %v4134_v7, 0.0  ;;  %v4093_v13 = vmul.f32 %v5581_v8, %v7035_v30  ;;  %v5533_v14 = vpop.f32.mrb[10].mxu0 }
 0x201   : > { %4207 = vst [vmem:[%s7050_s22 + $0x38] sm:$0xff] %v4171_v9  ;;  %v4137_v15 = vadd.f32 %v7042_v33, %v4094_v10  ;;  %v5582_v16 = vadd.f32 %v5533_v14, %v7015_v22  ;;  %v3913_v17 = vpop.f32.mrb[11].mxu0 }
 0x202   : > { %4206 = vst [vmem:[%s7050_s22 + $0x30] sm:$0xff] %v4170_v12  ;;  %v4136_v18 = vadd.f32 %v7042_v33, %v4093_v13  ;;  %v5583_v19 = vadd.f32 %v3913_v17, %v7017_v23 }
 0x203   : > { %v4173_v20 = vmax.f32 %v4137_v15, 0.0  ;;  %v4096_v21 = vmul.f32 %v5582_v16, %v7035_v30 }
 0x204   : > { %v4172_v29 = vmax.f32 %v4136_v18, 0.0  ;;  %v4095_v31 = vmul.f32 %v5583_v19, %v7035_v30  ;;  %v5536_v32 = vpop.f32.mrb[12].mxu0 }
 0x205   : > { %4209 = vst [vmem:[%s7050_s22 + $0x48] sm:$0xff] %v4173_v20  ;;  %v4139_v34 = vadd.f32 %v7042_v33, %v4096_v21  ;;  %v5584_v22 = vadd.f32 %v5536_v32, %v7019_v24  ;;  %v3923_v35 = vpop.f32.mrb[13].mxu0 }
 0x206   : > { %4208 = vst [vmem:[%s7050_s22 + $0x40] sm:$0xff] %v4172_v29  ;;  %v4138_v36 = vadd.f32 %v7042_v33, %v4095_v31  ;;  %v5585_v23 = vadd.f32 %v3923_v35, %v7021_v25 }
 0x207   : > { %v4175_v37 = vmax.f32 %v4139_v34, 0.0  ;;  %v4098_v38 = vmul.f32 %v5584_v22, %v7035_v30 }
 0x208   : > { %v4174_v39 = vmax.f32 %v4138_v36, 0.0  ;;  %v4097_v40 = vmul.f32 %v5585_v23, %v7035_v30  ;;  %v5539_v41 = vpop.f32.mrb[14].mxu0 }
 0x209   : > { %4211 = vst [vmem:[%s7050_s22 + $0x58] sm:$0xff] %v4175_v37  ;;  %v4141_v42 = vadd.f32 %v7042_v33, %v4098_v38  ;;  %v5586_v24 = vadd.f32 %v5539_v41, %v7023_v26  ;;  %v3933_v43 = vpop.f32.mrb[15].mxu0 }
 0x20a   : > { %4210 = vst [vmem:[%s7050_s22 + $0x50] sm:$0xff] %v4174_v39  ;;  %v4140_v44 = vadd.f32 %v7042_v33, %v4097_v40  ;;  %v5587_v25 = vadd.f32 %v3933_v43, %v7025_v27 }
 0x20b   : > { %v4177_v45 = vmax.f32 %v4141_v42, 0.0  ;;  %v4100_v46 = vmul.f32 %v5586_v24, %v7035_v30 }
 0x20c   : > { %v4176_v49 = vmax.f32 %v4140_v44, 0.0  ;;  %v4099_v51 = vmul.f32 %v5587_v25, %v7035_v30  ;;  %v5542_v53 = vpop.f32.mrb[16].mxu0 }
 0x20d   : > { %4213 = vst [vmem:[%s7050_s22 + $0x68] sm:$0xff] %v4177_v45  ;;  %v4143_v55 = vadd.f32 %v7042_v33, %v4100_v46  ;;  %v5588_v57 = vadd.f32 %v5542_v53, %v7027_v11  ;;  %v3943_v26 = vpop.f32.mrb[17].mxu0 }
 0x20e   : > { %4212 = vst [vmem:[%s7050_s22 + $0x60] sm:$0xff] %v4176_v49  ;;  %v4142_v59 = vadd.f32 %v7042_v33, %v4099_v51  ;;  %v5589_v27 = vadd.f32 %v3943_v26, %v7029_v28 }
 0x20f   : > { %v4179_v61 = vmax.f32 %v4143_v55, 0.0  ;;  %v4102_v63 = vmul.f32 %v5588_v57, %v7035_v30 }
 0x210   : > { %v4178_v2 = vmax.f32 %v4142_v59, 0.0  ;;  %v4101_v4 = vmul.f32 %v5589_v27, %v7035_v30  ;;  %v5321_v47 = vpop.f32.mrb[18].mxu1  ;;  %v5545_v6 = vpop.f32.mrb[18].mxu0 }
 0x211   : > { %4215 = vst [vmem:[%s7050_s22 + $0x78] sm:$0xff] %v4179_v61  ;;  %v4145_v48 = vadd.f32 %v7042_v33, %v4102_v63  ;;  %v5590_v11 = vadd.f32 %v5545_v6, %v5321_v47  ;;  %v2233_v50 = vpop.f32.mrb[19].mxu1  ;;  %v3953_v52 = vpop.f32.mrb[19].mxu0 }
 0x212   : > { %4214 = vst [vmem:[%s7050_s22 + $0x70] sm:$0xff] %v4178_v2  ;;  %v4144_v54 = vadd.f32 %v7042_v33, %v4101_v4  ;;  %v5591_v28 = vadd.f32 %v3953_v52, %v2233_v50 }
 0x213   : > { %v4181_v56 = vmax.f32 %v4145_v48, 0.0  ;;  %v4104_v58 = vmul.f32 %v5590_v11, %v7035_v30 }
 0x214   : > { %v4180_v60 = vmax.f32 %v4144_v54, 0.0  ;;  %v4103_v62 = vmul.f32 %v5591_v28, %v7035_v30  ;;  %v5324_v0 = vpop.f32.mrb[20].mxu1  ;;  %v5548_v3 = vpop.f32.mrb[20].mxu0 }
 0x215   : > { %4217 = vst [vmem:[%s7050_s22 + $0x88] sm:$0xff] %v4181_v56  ;;  %v4147_v5 = vadd.f32 %v7042_v33, %v4104_v58  ;;  %v5592_v1 = vadd.f32 %v5548_v3, %v5324_v0  ;;  %v2243_v7 = vpop.f32.mrb[21].mxu1  ;;  %v3963_v8 = vpop.f32.mrb[21].mxu0 }
 0x216   : > { %4216 = vst [vmem:[%s7050_s22 + $0x80] sm:$0xff] %v4180_v60  ;;  %v4146_v9 = vadd.f32 %v7042_v33, %v4103_v62  ;;  %v5593_v10 = vadd.f32 %v3963_v8, %v2243_v7 }
 0x217   : > { %v4183_v12 = vmax.f32 %v4147_v5, 0.0  ;;  %v4106_v13 = vmul.f32 %v5592_v1, %v7035_v30 }
 0x218   : > { %v4182_v14 = vmax.f32 %v4146_v9, 0.0  ;;  %v4105_v15 = vmul.f32 %v5593_v10, %v7035_v30  ;;  %v5327_v16 = vpop.f32.mrb[22].mxu1  ;;  %v5551_v17 = vpop.f32.mrb[22].mxu0 }
 0x219   : > { %4219 = vst [vmem:[%s7050_s22 + $0x98] sm:$0xff] %v4183_v12  ;;  %v4149_v18 = vadd.f32 %v7042_v33, %v4106_v13  ;;  %v5594_v19 = vadd.f32 %v5551_v17, %v5327_v16  ;;  %v2253_v20 = vpop.f32.mrb[23].mxu1  ;;  %v3973_v21 = vpop.f32.mrb[23].mxu0 }
 0x21a   : > { %4218 = vst [vmem:[%s7050_s22 + $0x90] sm:$0xff] %v4182_v14  ;;  %v4148_v29 = vadd.f32 %v7042_v33, %v4105_v15  ;;  %v5595_v31 = vadd.f32 %v3973_v21, %v2253_v20 }
 0x21b   : > { %v4185_v32 = vmax.f32 %v4149_v18, 0.0  ;;  %v4108_v34 = vmul.f32 %v5594_v19, %v7035_v30 }
 0x21c   : > { %v4184_v22 = vmax.f32 %v4148_v29, 0.0  ;;  %v4107_v35 = vmul.f32 %v5595_v31, %v7035_v30  ;;  %v5330_v36 = vpop.f32.mrb[24].mxu1  ;;  %v5554_v23 = vpop.f32.mrb[24].mxu0 }
 0x21d   : > { %4221 = vst [vmem:[%s7050_s22 + $0xa8] sm:$0xff] %v4185_v32  ;;  %v4151_v37 = vadd.f32 %v7042_v33, %v4108_v34  ;;  %v5596_v38 = vadd.f32 %v5554_v23, %v5330_v36  ;;  %v2263_v39 = vpop.f32.mrb[25].mxu1  ;;  %v3983_v40 = vpop.f32.mrb[25].mxu0 }
 0x21e   : > { %4220 = vst [vmem:[%s7050_s22 + $0xa0] sm:$0xff] %v4184_v22  ;;  %v4150_v41 = vadd.f32 %v7042_v33, %v4107_v35  ;;  %v5597_v42 = vadd.f32 %v3983_v40, %v2263_v39 }
 0x21f   : > { %v4187_v24 = vmax.f32 %v4151_v37, 0.0  ;;  %v4110_v43 = vmul.f32 %v5596_v38, %v7035_v30 }
 0x220   : > { %v4186_v44 = vmax.f32 %v4150_v41, 0.0  ;;  %v4109_v25 = vmul.f32 %v5597_v42, %v7035_v30  ;;  %v5333_v45 = vpop.f32.mrb[26].mxu1  ;;  %v5557_v46 = vpop.f32.mrb[26].mxu0 }
 0x221   : > { %4223 = vst [vmem:[%s7050_s22 + $0xb8] sm:$0xff] %v4187_v24  ;;  %v4153_v49 = vadd.f32 %v7042_v33, %v4110_v43  ;;  %v5598_v51 = vadd.f32 %v5557_v46, %v5333_v45  ;;  %v2273_v53 = vpop.f32.mrb[27].mxu1  ;;  %v3993_v55 = vpop.f32.mrb[27].mxu0 }
 0x222   : > { %4222 = vst [vmem:[%s7050_s22 + $0xb0] sm:$0xff] %v4186_v44  ;;  %v4152_v57 = vadd.f32 %v7042_v33, %v4109_v25  ;;  %v5599_v26 = vadd.f32 %v3993_v55, %v2273_v53 }
 0x223   : > { %v4189_v59 = vmax.f32 %v4153_v49, 0.0  ;;  %v4112_v27 = vmul.f32 %v5598_v51, %v7035_v30 }
 0x224   : > { %v4188_v61 = vmax.f32 %v4152_v57, 0.0  ;;  %v4111_v63 = vmul.f32 %v5599_v26, %v7035_v30  ;;  %v5336_v2 = vpop.f32.mrb[28].mxu1  ;;  %v5560_v4 = vpop.f32.mrb[28].mxu0 }
 0x225   : > { %4225 = vst [vmem:[%s7050_s22 + $0xc8] sm:$0xff] %v4189_v59  ;;  %v4155_v47 = vadd.f32 %v7042_v33, %v4112_v27  ;;  %v5600_v6 = vadd.f32 %v5560_v4, %v5336_v2  ;;  %v2283_v48 = vpop.f32.mrb[29].mxu1  ;;  %v4003_v11 = vpop.f32.mrb[29].mxu0 }
 0x226   : > { %4224 = vst [vmem:[%s7050_s22 + $0xc0] sm:$0xff] %v4188_v61  ;;  %v4154_v50 = vadd.f32 %v7042_v33, %v4111_v63  ;;  %v5601_v52 = vadd.f32 %v4003_v11, %v2283_v48 }
 0x227   : > { %v4191_v54 = vmax.f32 %v4155_v47, 0.0  ;;  %v4114_v28 = vmul.f32 %v5600_v6, %v7035_v30 }
 0x228   : > { %v4190_v56 = vmax.f32 %v4154_v50, 0.0  ;;  %v4113_v58 = vmul.f32 %v5601_v52, %v7035_v30  ;;  %v5339_v60 = vpop.f32.mrb[30].mxu1  ;;  %v5563_v62 = vpop.f32.mrb[30].mxu0 }
 0x229   : > { %4227 = vst [vmem:[%s7050_s22 + $0xd8] sm:$0xff] %v4191_v54  ;;  %v4157_v0 = vadd.f32 %v7042_v33, %v4114_v28  ;;  %v5602_v3 = vadd.f32 %v5563_v62, %v5339_v60  ;;  %v2293_v5 = vpop.f32.mrb[31].mxu1  ;;  %v4013_v1 = vpop.f32.mrb[31].mxu0 }
 0x22a   : > { %4226 = vst [vmem:[%s7050_s22 + $0xd0] sm:$0xff] %v4190_v56  ;;  %v4156_v7 = vadd.f32 %v7042_v33, %v4113_v58  ;;  %v5603_v8 = vadd.f32 %v4013_v1, %v2293_v5 }
 0x22b   : > { %v4193_v9 = vmax.f32 %v4157_v0, 0.0  ;;  %v4116_v10 = vmul.f32 %v5602_v3, %v7035_v30 }
 0x22c   : > { %v4192_v12 = vmax.f32 %v4156_v7, 0.0  ;;  %v4115_v13 = vmul.f32 %v5603_v8, %v7035_v30  ;;  %v5342_v14 = vpop.f32.mrb[32].mxu1  ;;  %v5566_v15 = vpop.f32.mrb[32].mxu0 }
 0x22d   : > { %4229 = vst [vmem:[%s7050_s22 + $0xe8] sm:$0xff] %v4193_v9  ;;  %v4159_v16 = vadd.f32 %v7042_v33, %v4116_v10  ;;  %v5604_v17 = vadd.f32 %v5566_v15, %v5342_v14  ;;  %v2303_v18 = vpop.f32.mrb[33].mxu1  ;;  %v4023_v19 = vpop.f32.mrb[33].mxu0 }
 0x22e   : > { %4228 = vst [vmem:[%s7050_s22 + $0xe0] sm:$0xff] %v4192_v12  ;;  %v4158_v20 = vadd.f32 %v7042_v33, %v4115_v13  ;;  %v5605_v21 = vadd.f32 %v4023_v19, %v2303_v18 }
 0x22f   : > { %v4195_v29 = vmax.f32 %v4159_v16, 0.0  ;;  %v4118_v31 = vmul.f32 %v5604_v17, %v7035_v30 }
 0x230   : > { %v4194_v32 = vmax.f32 %v4158_v20, 0.0  ;;  %v4117_v34 = vmul.f32 %v5605_v21, %v7035_v30  ;;  %v5345_v22 = vpop.f32.mrb[34].mxu1  ;;  %v5569_v35 = vpop.f32.mrb[34].mxu0 }
 0x231   : > { %4231 = vst [vmem:[%s7050_s22 + $0xf8] sm:$0xff] %v4195_v29  ;;  %v4161_v36 = vadd.f32 %v7042_v33, %v4118_v31  ;;  %v5606_v23 = vadd.f32 %v5569_v35, %v5345_v22  ;;  %v2313_v37 = vpop.f32.mrb[35].mxu1  ;;  %v4033_v38 = vpop.f32.mrb[35].mxu0 }
 0x232   : > { %4230 = vst [vmem:[%s7050_s22 + $0xf0] sm:$0xff] %v4194_v32  ;;  %v4160_v39 = vadd.f32 %v7042_v33, %v4117_v34  ;;  %v5607_v40 = vadd.f32 %v4033_v38, %v2313_v37 }
 0x233   : > { %v4197_v41 = vmax.f32 %v4161_v36, 0.0  ;;  %v4120_v42 = vmul.f32 %v5606_v23, %v7035_v30 }
 0x234   : > { %v4196_v24 = vmax.f32 %v4160_v39, 0.0  ;;  %v4119_v43 = vmul.f32 %v5607_v40, %v7035_v30 }
 0x235   : > { %4233 = vst [vmem:[%s7050_s22 + $0x108] sm:$0xff] %v4197_v41  ;;  %v4163_v44 = vadd.f32 %v7042_v33, %v4120_v42 }
 0x236   : > { %4232 = vst [vmem:[%s7050_s22 + $0x100] sm:$0xff] %v4196_v24  ;;  %v4162_v25 = vadd.f32 %v7042_v33, %v4119_v43 }
 0x237   : > { %v4199_v45 = vmax.f32 %v4163_v44, 0.0 }
 0x238   : > { %v4198_v46 = vmax.f32 %v4162_v25, 0.0 }
 0x239   : > { %4235 = vst [vmem:[%s7050_s22 + $0x118] sm:$0xff] %v4199_v45 }
 0x23a   : > { %4234 = vst [vmem:[%s7050_s22 + $0x110] sm:$0xff] %v4198_v46 }
 0x23b   : > { %5933 = shalt.err (!%p5930_p5)
}
 0x23c   : > { %s5934_s10 = scalar_lea.hbm %s7165_s5, 4608  ;;  %s5938_s13 = scalar_lea.hbm %s7223_s4, 9216 }
 0x23d   : > { %p5935_p6 = scmp.ne.s32.totalorder %s7165_s5, %s5934_s10  ;;  %p5939_p10 = scmp.lt.u32.totalorder %s7165_s5, %s7223_s4 }
 0x23e   : > { %p5940_p11 = scmp.lt.u32.totalorder %s5938_s13, %s5934_s10  ;;  %p5942_p13 = scmp.lt.u32.totalorder %s5934_s10, %s7165_s5 }
 0x23f   : > { %p5936_p7 = pnand %p5935_p6, %p6068_p4 }
 0x240   : > { %p5941_p12 = por %p5940_p11, %p5939_p10 }
 0x241   : > { %p5937_p9 = pneg %p5936_p7 }
 0x242   : > { %p5943_p0 = por %p5942_p13, %p5941_p12 }
 0x244   : > { %p5944_p1 = pnand %p5943_p0, %p5937_p9 }
 0x246   : > { %5947 = shalt.err (!%p5944_p1)
}
 0x247   : > { %s6001_s22 = smov 128   ;;  %s6002_s24 = smov 8  }
 0x248   : > { %5863 = dma.vmem_to_hbm [thread:$0]  (%p6068_p4), %s7167_s26, 4608, %s7165_s5, %s7173_s18, %s6001_s22, %s6001_s22, %s6002_s24  }
 0x249 PF: > { %p5869_p2 = scmp.ge.s32.totalorder %s5998_s20, 2  ;;  %s4268_s29 = sand.u32 1, %s5978_s15  }
 0x24a   : > { %s4269_s30 = scalar_lea.sflag [#allocation3], %s4268_s29 }
 0x24b   : > { %p5866_p3 = pnand %p5869_p2, %p6075_p8 }
 0x24d   : > { %5973 = dma.done.wait (!%p5866_p3), %s4269_s30, 4608  }
 0x24e   : > { %5975 = vsyncadd (!%p5866_p3), %s4269_s30, 4294962688  ;;  %s17_s20 = sadd.s32 1, %s5998_s20   ;;  %s7226_s15 = smov %s5982_s16 }
 0x24f   : > { %p14_p5 = scmp.ge.s32.totalorder %s17_s20, 4   ;;  %s7227_s16 = smov %s5986_s17 }
 0x250   : > { %s7228_s17 = smov %s6081_s28  ;;  %s7229_s18 = smov %s5994_s19 }
 0x251   : > { %s7230_s19 = smov %s7232_s23  ;;  %16 = sbr.rel (!%p14_p5) target bundleno = 4 (0x4), region = 88 }
 0x258   :  { %4274 = vsyncpa [#allocation3], 1 }
 0x259   :  { %4276 = vsyncpa [#allocation3 + $0x1], 1 }

</bundles_post_ra>
